<compile_context>
chip_gen: v7x
topology: tpu7x:2x2x1
jax: 0.10.0
libtpu: 0.0.40
codegen_flags: <defaults>
</compile_context>

<pallas_src>
import functools

import jax
import jax.numpy as jnp
from jax.experimental import pallas as pl
from jax.experimental.pallas import tpu as pltpu

_EPS = 1e-5


def _round_up(x, m):
    return ((x + m - 1) // m) * m


def _reflect_pad1(x):
    return jnp.pad(x, ((0, 0), (0, 0), (1, 1), (1, 1)), mode="reflect")


# ---------------------------------------------------------------------------
# Kernel
# ---------------------------------------------------------------------------
def _residual_block_kernel(validf_ref, mc0_ref, mcw_ref, mr0_ref, mrh_ref,
                           xp_ref, w1_ref, w2_ref, out_ref, buf_ref, acc_ref,
                           *, C, Wp, Lp, Lx, M, inv_hw):
    validf = validf_ref[...]                               # (1, Lp) f32

    # --- entry: zero the left pad margin once; cast padded x to bf16 once ---
    buf_ref[:, :M] = jnp.zeros((C, M), jnp.bfloat16)
    buf_ref[:, M:M + Lx] = xp_ref[...].astype(jnp.bfloat16)

    def conv3x3(w_ref):
        # 3x3 conv as 9 accumulating bf16 MXU matmuls on statically shifted
        # slices of the flat padded slab:  out[:,h*Wp+w] += W_k @ in[:,(h+kh)*Wp+(w+kw)]
        for k in range(9):
            kh, kw = divmod(k, 3)
            s = M + kh * Wp + kw
            prod = jnp.dot(w_ref[k], buf_ref[:, s:s + Lp],
                           preferred_element_type=jnp.float32)
            if k == 0:
                acc_ref[...] = prod
            else:
                acc_ref[...] += prod
        return acc_ref[...]

    def masked_instance_norm(y):
        # Stats over the H*W valid lanes only; output is exactly 0 at invalid
        # lanes (the pad blend below relies on that).
        mean = jnp.sum(y * validf, axis=1, keepdims=True) * inv_hw
        cent = (y - mean) * validf
        var = jnp.sum(cent * cent, axis=1, keepdims=True) * inv_hw
        return cent * jax.lax.rsqrt(var + _EPS)

    # ---- stage 1: conv -> masked InstanceNorm -> ReLU ----------------------
    y1 = jnp.maximum(masked_instance_norm(conv3x3(w1_ref)), 0.0)
    buf_ref[:, M:M + Lp] = y1.astype(jnp.bfloat16)

    # ---- reflection-pad y1 in place (width pass, then height pass) ---------
    # Border-selector masks are (1, Lp); since y1's invalid lanes and the
    # zeroed margins/tail are exactly 0, a mask-blend is an exact select.
    m_c0 = mc0_ref[...].astype(jnp.bfloat16)
    m_cw = mcw_ref[...].astype(jnp.bfloat16)
    m_r0 = mr0_ref[...].astype(jnp.bfloat16)
    m_rh = mrh_ref[...].astype(jnp.bfloat16)

    # width pad:  col 0 <- col 1,  interior <- col-1,  col Wp-1 <- col W-2
    a_int = buf_ref[:, M - 1:M - 1 + Lp]
    a_lft = buf_ref[:, M + 1:M + 1 + Lp]
    a_rgt = buf_ref[:, M - 3:M - 3 + Lp]
    buf_ref[:, M:M + Lp] = a_int + m_c0 * a_lft + m_cw * a_rgt

    # height pad: row 0 <- row 1,  interior <- row-1,  row Hp-1 <- row H-2
    b_int = buf_ref[:, M - Wp:M - Wp + Lp]
    b_top = buf_ref[:, M + Wp:M + Wp + Lp]
    b_bot = buf_ref[:, M - 3 * Wp:M - 3 * Wp + Lp]
    buf_ref[:, M:M + Lp] = b_int + m_r0 * b_top + m_rh * b_bot

    # ---- stage 2: conv -> masked InstanceNorm -> residual add --------------
    y2 = masked_instance_norm(conv3x3(w2_ref))
    res = xp_ref[:, Wp + 1:Wp + 1 + Lp]                    # original x, f32 exact
    out_ref[:, :Lp] = (res + y2).astype(out_ref.dtype)
    out_ref[:, Lp:] = jnp.zeros((C, Lx - Lp), out_ref.dtype)


# ---------------------------------------------------------------------------
# Wrapper
# ---------------------------------------------------------------------------
def residual_block(x, w1, b1, w2, b2):
    """Pallas forward of the CycleGAN ResidualBlock.

    b1 / b2 are accepted for API parity with the PyTorch module but are not
    fed to the kernel: InstanceNorm2d (affine=False) subtracts the per-channel
    mean immediately after the conv, so a constant per-channel bias cancels
    exactly.
    """
    del b1, b2
    N, C, H, W = x.shape
    assert H >= 2 and W >= 2, "ReflectionPad2d(1) needs H, W >= 2"
    Hp, Wp = H + 2, W + 2
    Lp = Hp * Wp
    # Left margin >= 3*Wp so every reflection-pad shift is a static in-bounds
    # slice; rounded to 128 so the main data region starts lane-aligned.
    M = _round_up(max(3 * Wp, 8), 128)
    Lx = _round_up(Lp + 2 * Wp + 2, 128)   # padded slab width (+ zero tail)
    LBUF = M + Lx

    # Reflection-pad the input once and flatten; zero tail keeps all shifted
    # conv reads (and the stage-2 tail) finite/zero.
    xp = _reflect_pad1(x.astype(jnp.float32)).reshape(N, C, Lp)
    xp = jnp.pad(xp, ((0, 0), (0, 0), (0, Lx - Lp)))

    # (Cout, Cin, 3, 3) -> (9, Cout, Cin) bf16 with k = kh*3 + kw.
    w1m = jnp.transpose(w1, (2, 3, 0, 1)).reshape(9, C, C).astype(jnp.bfloat16)
    w2m = jnp.transpose(w2, (2, 3, 0, 1)).reshape(9, C, C).astype(jnp.bfloat16)

    # (1, Lp) masks precomputed on the host side (no in-kernel full-slab work).
    pos = jnp.arange(Lp, dtype=jnp.int32)
    colv, rowv = pos % Wp, pos // Wp
    validf = ((colv < W) & (rowv < H)).astype(jnp.float32)[None, :]
    mc0 = (colv == 0).astype(jnp.float32)[None, :]
    mcw = (colv == Wp - 1).astype(jnp.float32)[None, :]
    mr0 = (rowv == 0).astype(jnp.float32)[None, :]
    mrh = (rowv == Hp - 1).astype(jnp.float32)[None, :]

    kernel = functools.partial(_residual_block_kernel, C=C, Wp=Wp, Lp=Lp,
                               Lx=Lx, M=M, inv_hw=1.0 / float(H * W))

    mask_spec = pl.BlockSpec((1, Lp), lambda n: (0, 0))
    out_flat = pl.pallas_call(
        kernel,
        out_shape=jax.ShapeDtypeStruct((N, C, Lx), jnp.float32),
        grid=(N,),
        in_specs=[
            mask_spec,                                       # validf
            mask_spec, mask_spec, mask_spec, mask_spec,      # pad selectors
            pl.BlockSpec((None, C, Lx), lambda n: (n, 0, 0)),  # padded x (f32)
            pl.BlockSpec((9, C, C), lambda n: (0, 0, 0)),      # w1 (bf16)
            pl.BlockSpec((9, C, C), lambda n: (0, 0, 0)),      # w2 (bf16)
        ],
        out_specs=pl.BlockSpec((None, C, Lx), lambda n: (n, 0, 0)),
        scratch_shapes=[pltpu.VMEM((C, LBUF), jnp.bfloat16),   # xp/y1/pad slab
                        pltpu.VMEM((C, Lp), jnp.float32)],     # conv accumulator
        compiler_params=pltpu.CompilerParams(
            dimension_semantics=("parallel",),    # batch across TCs (megacore)
            vmem_limit_bytes=64 * 1024 * 1024),
    )(validf, mc0, mcw, mr0, mrh, xp, w1m, w2m)

    # Valid conv outputs sit at the top-left-aligned (h, w) positions.
    return out_flat[:, :, :Lp].reshape(N, C, Hp, Wp)[:, :, :H, :W]


# ---------------------------------------------------------------------------
# Pure-JAX reference (for correctness check)
# ---------------------------------------------------------------------------
def residual_block_ref(x, w1, b1, w2, b2):
    def conv(x, w, b):
        xp = _reflect_pad1(x)
        y = jax.lax.conv_general_dilated(
            xp, w, (1, 1), "VALID",
            dimension_numbers=("NCHW", "OIHW", "NCHW"))
        return y + b[None, :, None, None]

    def inorm(y):
        m = jnp.mean(y, axis=(2, 3), keepdims=True)
        v = jnp.mean((y - m) ** 2, axis=(2, 3), keepdims=True)
        return (y - m) * jax.lax.rsqrt(v + _EPS)

    y = jnp.maximum(inorm(conv(x, w1, b1)), 0.0)
    y = inorm(conv(y, w2, b2))
    return x + y


# ---------------------------------------------------------------------------
if __name__ == "__main__":
    N, C, H, W = 2, 4, 16, 16

    key = jax.random.PRNGKey(0)
    kx, kw1, kb1, kw2, kb2 = jax.random.split(key, 5)

    bound = 1.0 / (C * 9) ** 0.5
    x = jax.random.normal(kx, (N, C, H, W), jnp.float32)
    w1 = jax.random.uniform(kw1, (C, C, 3, 3), jnp.float32, -bound, bound)
    b1 = jax.random.uniform(kb1, (C,), jnp.float32, -bound, bound)
    w2 = jax.random.uniform(kw2, (C, C, 3, 3), jnp.float32, -bound, bound)
    b2 = jax.random.uniform(kb2, (C,), jnp.float32, -bound, bound)

    out = jax.block_until_ready(jax.jit(residual_block)(x, w1, b1, w2, b2))
    ref = residual_block_ref(x, w1, b1, w2, b2)

    assert out.shape == (N, C, H, W)
    # bf16 MXU operands (f32 accumulation) -> loosened tolerance vs f32 ref.
    max_err = float(jnp.max(jnp.abs(out - ref)))
    assert jnp.allclose(out, ref, atol=5e-2, rtol=5e-2), max_err
    print("KERNEL_OK")
</pallas_src>

<mosaic_0001>
module attributes {stable_mosaic.version = 11 : i64} {
  func.func @_residual_block_kernel(%arg0: i32, %arg1: memref<1x324xf32, #tpu.memory_space<vmem>>, %arg2: memref<1x324xf32, #tpu.memory_space<vmem>>, %arg3: memref<1x324xf32, #tpu.memory_space<vmem>>, %arg4: memref<1x324xf32, #tpu.memory_space<vmem>>, %arg5: memref<1x324xf32, #tpu.memory_space<vmem>>, %arg6: memref<1x4x384xf32, #tpu.memory_space<vmem>>, %arg7: memref<9x4x4xbf16, #tpu.memory_space<vmem>>, %arg8: memref<9x4x4xbf16, #tpu.memory_space<vmem>>, %arg9: memref<1x4x384xf32, #tpu.memory_space<vmem>>, %arg10: memref<4x512xbf16, #tpu.memory_space<vmem>>, %arg11: memref<4x324xf32, #tpu.memory_space<vmem>>) attributes {dimension_semantics = [#tpu.dimension_semantics<parallel>], iteration_bounds = array<i64: 2>, scalar_prefetch = 0 : i64, scratch_operands = 2 : i64, tpu.core_type = #tpu.core_type<tc>, window_params = [{pipeline_mode = #tpu.pipeline_mode<synchronous>, transform_indices = @transform_0, window_bounds = array<i64: 1, 324>}, {pipeline_mode = #tpu.pipeline_mode<synchronous>, transform_indices = @transform_1, window_bounds = array<i64: 1, 324>}, {pipeline_mode = #tpu.pipeline_mode<synchronous>, transform_indices = @transform_2, window_bounds = array<i64: 1, 324>}, {pipeline_mode = #tpu.pipeline_mode<synchronous>, transform_indices = @transform_3, window_bounds = array<i64: 1, 324>}, {pipeline_mode = #tpu.pipeline_mode<synchronous>, transform_indices = @transform_4, window_bounds = array<i64: 1, 324>}, {transform_indices = @transform_5, window_bounds = array<i64: 1, 4, 384>}, {pipeline_mode = #tpu.pipeline_mode<synchronous>, transform_indices = @transform_6, window_bounds = array<i64: 9, 4, 4>}, {pipeline_mode = #tpu.pipeline_mode<synchronous>, transform_indices = @transform_7, window_bounds = array<i64: 9, 4, 4>}, {transform_indices = @transform_8, window_bounds = array<i64: 1, 4, 384>}]} {
    %c0 = arith.constant 0 : index
    %c0_0 = arith.constant 0 : index
    %0 = vector.load %arg1[%c0, %c0_0] : memref<1x324xf32, #tpu.memory_space<vmem>>, vector<1x324xf32>
    %cst = arith.constant 0.000000e+00 : bf16
    %1 = vector.broadcast %cst : bf16 to vector<4x128xbf16>
    %c0_1 = arith.constant 0 : index
    %c0_2 = arith.constant 0 : index
    %2 = vector.load %arg10[%c0_1, %c0_2] : memref<4x512xbf16, #tpu.memory_space<vmem>>, vector<4x128xbf16>
    tpu.vector_store %arg10[%c0_1, %c0_2], %1 {strides = array<i32>} : memref<4x512xbf16, #tpu.memory_space<vmem>>, vector<4x128xbf16>,
    %c0_3 = arith.constant 0 : index
    %c0_4 = arith.constant 0 : index
    %c0_5 = arith.constant 0 : index
    %3 = vector.load %arg6[%c0_3, %c0_4, %c0_5] : memref<1x4x384xf32, #tpu.memory_space<vmem>>, vector<1x4x384xf32>
    %4 = vector.shape_cast %3 : vector<1x4x384xf32> to vector<4x384xf32>
    %5 = arith.truncf %4 : vector<4x384xf32> to vector<4x384xbf16>
    %c0_6 = arith.constant 0 : index
    %c128 = arith.constant 128 : index
    %6 = vector.load %arg10[%c0_6, %c128] : memref<4x512xbf16, #tpu.memory_space<vmem>>, vector<4x384xbf16>
    tpu.vector_store %arg10[%c0_6, %c128], %5 {strides = array<i32>} : memref<4x512xbf16, #tpu.memory_space<vmem>>, vector<4x384xbf16>,
    %c0_7 = arith.constant 0 : index
    %c0_8 = arith.constant 0 : index
    %c0_9 = arith.constant 0 : index
    %7 = vector.load %arg7[%c0_7, %c0_8, %c0_9] : memref<9x4x4xbf16, #tpu.memory_space<vmem>>, vector<1x4x4xbf16>
    %8 = vector.shape_cast %7 : vector<1x4x4xbf16> to vector<4x4xbf16>
    %c0_10 = arith.constant 0 : index
    %c128_11 = arith.constant 128 : index
    %9 = vector.load %arg10[%c0_10, %c128_11] : memref<4x512xbf16, #tpu.memory_space<vmem>>, vector<4x324xbf16>
    %cst_12 = arith.constant dense<0.000000e+00> : vector<4x324xf32>
    %10 = tpu.matmul %8, %9, %cst_12 {dimension_numbers = #tpu.dot_dimension_numbers<[1], [0], [0], [1], [0, 0, 1, 1], [], []>} : vector<4x4xbf16>, vector<4x324xbf16>, vector<4x324xf32> -> vector<4x324xf32>
    %c0_13 = arith.constant 0 : index
    %c0_14 = arith.constant 0 : index
    %11 = vector.load %arg11[%c0_13, %c0_14] : memref<4x324xf32, #tpu.memory_space<vmem>>, vector<4x324xf32>
    tpu.vector_store %arg11[%c0_13, %c0_14], %10 {strides = array<i32>} : memref<4x324xf32, #tpu.memory_space<vmem>>, vector<4x324xf32>,
    %c1 = arith.constant 1 : index
    %c0_15 = arith.constant 0 : index
    %c0_16 = arith.constant 0 : index
    %12 = vector.load %arg7[%c1, %c0_15, %c0_16] : memref<9x4x4xbf16, #tpu.memory_space<vmem>>, vector<1x4x4xbf16>
    %13 = vector.shape_cast %12 : vector<1x4x4xbf16> to vector<4x4xbf16>
    %c0_17 = arith.constant 0 : index
    %c129 = arith.constant 129 : index
    %14 = vector.load %arg10[%c0_17, %c129] : memref<4x512xbf16, #tpu.memory_space<vmem>>, vector<4x324xbf16>
    %cst_18 = arith.constant dense<0.000000e+00> : vector<4x324xf32>
    %15 = tpu.matmul %13, %14, %cst_18 {dimension_numbers = #tpu.dot_dimension_numbers<[1], [0], [0], [1], [0, 0, 1, 1], [], []>} : vector<4x4xbf16>, vector<4x324xbf16>, vector<4x324xf32> -> vector<4x324xf32>
    %c0_19 = arith.constant 0 : index
    %c0_20 = arith.constant 0 : index
    %16 = vector.load %arg11[%c0_19, %c0_20] : memref<4x324xf32, #tpu.memory_space<vmem>>, vector<4x324xf32>
    %17 = arith.addf %16, %15 : vector<4x324xf32>
    %c0_21 = arith.constant 0 : index
    %c0_22 = arith.constant 0 : index
    %18 = vector.load %arg11[%c0_21, %c0_22] : memref<4x324xf32, #tpu.memory_space<vmem>>, vector<4x324xf32>
    tpu.vector_store %arg11[%c0_21, %c0_22], %17 {strides = array<i32>} : memref<4x324xf32, #tpu.memory_space<vmem>>, vector<4x324xf32>,
    %c2 = arith.constant 2 : index
    %c0_23 = arith.constant 0 : index
    %c0_24 = arith.constant 0 : index
    %19 = vector.load %arg7[%c2, %c0_23, %c0_24] : memref<9x4x4xbf16, #tpu.memory_space<vmem>>, vector<1x4x4xbf16>
    %20 = vector.shape_cast %19 : vector<1x4x4xbf16> to vector<4x4xbf16>
    %c0_25 = arith.constant 0 : index
    %c130 = arith.constant 130 : index
    %21 = vector.load %arg10[%c0_25, %c130] : memref<4x512xbf16, #tpu.memory_space<vmem>>, vector<4x324xbf16>
    %cst_26 = arith.constant dense<0.000000e+00> : vector<4x324xf32>
    %22 = tpu.matmul %20, %21, %cst_26 {dimension_numbers = #tpu.dot_dimension_numbers<[1], [0], [0], [1], [0, 0, 1, 1], [], []>} : vector<4x4xbf16>, vector<4x324xbf16>, vector<4x324xf32> -> vector<4x324xf32>
    %c0_27 = arith.constant 0 : index
    %c0_28 = arith.constant 0 : index
    %23 = vector.load %arg11[%c0_27, %c0_28] : memref<4x324xf32, #tpu.memory_space<vmem>>, vector<4x324xf32>
    %24 = arith.addf %23, %22 : vector<4x324xf32>
    %c0_29 = arith.constant 0 : index
    %c0_30 = arith.constant 0 : index
    %25 = vector.load %arg11[%c0_29, %c0_30] : memref<4x324xf32, #tpu.memory_space<vmem>>, vector<4x324xf32>
    tpu.vector_store %arg11[%c0_29, %c0_30], %24 {strides = array<i32>} : memref<4x324xf32, #tpu.memory_space<vmem>>, vector<4x324xf32>,
    %c3 = arith.constant 3 : index
    %c0_31 = arith.constant 0 : index
    %c0_32 = arith.constant 0 : index
    %26 = vector.load %arg7[%c3, %c0_31, %c0_32] : memref<9x4x4xbf16, #tpu.memory_space<vmem>>, vector<1x4x4xbf16>
    %27 = vector.shape_cast %26 : vector<1x4x4xbf16> to vector<4x4xbf16>
    %c0_33 = arith.constant 0 : index
    %c146 = arith.constant 146 : index
    %28 = vector.load %arg10[%c0_33, %c146] : memref<4x512xbf16, #tpu.memory_space<vmem>>, vector<4x324xbf16>
    %cst_34 = arith.constant dense<0.000000e+00> : vector<4x324xf32>
    %29 = tpu.matmul %27, %28, %cst_34 {dimension_numbers = #tpu.dot_dimension_numbers<[1], [0], [0], [1], [0, 0, 1, 1], [], []>} : vector<4x4xbf16>, vector<4x324xbf16>, vector<4x324xf32> -> vector<4x324xf32>
    %c0_35 = arith.constant 0 : index
    %c0_36 = arith.constant 0 : index
    %30 = vector.load %arg11[%c0_35, %c0_36] : memref<4x324xf32, #tpu.memory_space<vmem>>, vector<4x324xf32>
    %31 = arith.addf %30, %29 : vector<4x324xf32>
    %c0_37 = arith.constant 0 : index
    %c0_38 = arith.constant 0 : index
    %32 = vector.load %arg11[%c0_37, %c0_38] : memref<4x324xf32, #tpu.memory_space<vmem>>, vector<4x324xf32>
    tpu.vector_store %arg11[%c0_37, %c0_38], %31 {strides = array<i32>} : memref<4x324xf32, #tpu.memory_space<vmem>>, vector<4x324xf32>,
    %c4 = arith.constant 4 : index
    %c0_39 = arith.constant 0 : index
    %c0_40 = arith.constant 0 : index
    %33 = vector.load %arg7[%c4, %c0_39, %c0_40] : memref<9x4x4xbf16, #tpu.memory_space<vmem>>, vector<1x4x4xbf16>
    %34 = vector.shape_cast %33 : vector<1x4x4xbf16> to vector<4x4xbf16>
    %c0_41 = arith.constant 0 : index
    %c147 = arith.constant 147 : index
    %35 = vector.load %arg10[%c0_41, %c147] : memref<4x512xbf16, #tpu.memory_space<vmem>>, vector<4x324xbf16>
    %cst_42 = arith.constant dense<0.000000e+00> : vector<4x324xf32>
    %36 = tpu.matmul %34, %35, %cst_42 {dimension_numbers = #tpu.dot_dimension_numbers<[1], [0], [0], [1], [0, 0, 1, 1], [], []>} : vector<4x4xbf16>, vector<4x324xbf16>, vector<4x324xf32> -> vector<4x324xf32>
    %c0_43 = arith.constant 0 : index
    %c0_44 = arith.constant 0 : index
    %37 = vector.load %arg11[%c0_43, %c0_44] : memref<4x324xf32, #tpu.memory_space<vmem>>, vector<4x324xf32>
    %38 = arith.addf %37, %36 : vector<4x324xf32>
    %c0_45 = arith.constant 0 : index
    %c0_46 = arith.constant 0 : index
    %39 = vector.load %arg11[%c0_45, %c0_46] : memref<4x324xf32, #tpu.memory_space<vmem>>, vector<4x324xf32>
    tpu.vector_store %arg11[%c0_45, %c0_46], %38 {strides = array<i32>} : memref<4x324xf32, #tpu.memory_space<vmem>>, vector<4x324xf32>,
    %c5 = arith.constant 5 : index
    %c0_47 = arith.constant 0 : index
    %c0_48 = arith.constant 0 : index
    %40 = vector.load %arg7[%c5, %c0_47, %c0_48] : memref<9x4x4xbf16, #tpu.memory_space<vmem>>, vector<1x4x4xbf16>
    %41 = vector.shape_cast %40 : vector<1x4x4xbf16> to vector<4x4xbf16>
    %c0_49 = arith.constant 0 : index
    %c148 = arith.constant 148 : index
    %42 = vector.load %arg10[%c0_49, %c148] : memref<4x512xbf16, #tpu.memory_space<vmem>>, vector<4x324xbf16>
    %cst_50 = arith.constant dense<0.000000e+00> : vector<4x324xf32>
    %43 = tpu.matmul %41, %42, %cst_50 {dimension_numbers = #tpu.dot_dimension_numbers<[1], [0], [0], [1], [0, 0, 1, 1], [], []>} : vector<4x4xbf16>, vector<4x324xbf16>, vector<4x324xf32> -> vector<4x324xf32>
    %c0_51 = arith.constant 0 : index
    %c0_52 = arith.constant 0 : index
    %44 = vector.load %arg11[%c0_51, %c0_52] : memref<4x324xf32, #tpu.memory_space<vmem>>, vector<4x324xf32>
    %45 = arith.addf %44, %43 : vector<4x324xf32>
    %c0_53 = arith.constant 0 : index
    %c0_54 = arith.constant 0 : index
    %46 = vector.load %arg11[%c0_53, %c0_54] : memref<4x324xf32, #tpu.memory_space<vmem>>, vector<4x324xf32>
    tpu.vector_store %arg11[%c0_53, %c0_54], %45 {strides = array<i32>} : memref<4x324xf32, #tpu.memory_space<vmem>>, vector<4x324xf32>,
    %c6 = arith.constant 6 : index
    %c0_55 = arith.constant 0 : index
    %c0_56 = arith.constant 0 : index
    %47 = vector.load %arg7[%c6, %c0_55, %c0_56] : memref<9x4x4xbf16, #tpu.memory_space<vmem>>, vector<1x4x4xbf16>
    %48 = vector.shape_cast %47 : vector<1x4x4xbf16> to vector<4x4xbf16>
    %c0_57 = arith.constant 0 : index
    %c164 = arith.constant 164 : index
    %49 = vector.load %arg10[%c0_57, %c164] : memref<4x512xbf16, #tpu.memory_space<vmem>>, vector<4x324xbf16>
    %cst_58 = arith.constant dense<0.000000e+00> : vector<4x324xf32>
    %50 = tpu.matmul %48, %49, %cst_58 {dimension_numbers = #tpu.dot_dimension_numbers<[1], [0], [0], [1], [0, 0, 1, 1], [], []>} : vector<4x4xbf16>, vector<4x324xbf16>, vector<4x324xf32> -> vector<4x324xf32>
    %c0_59 = arith.constant 0 : index
    %c0_60 = arith.constant 0 : index
    %51 = vector.load %arg11[%c0_59, %c0_60] : memref<4x324xf32, #tpu.memory_space<vmem>>, vector<4x324xf32>
    %52 = arith.addf %51, %50 : vector<4x324xf32>
    %c0_61 = arith.constant 0 : index
    %c0_62 = arith.constant 0 : index
    %53 = vector.load %arg11[%c0_61, %c0_62] : memref<4x324xf32, #tpu.memory_space<vmem>>, vector<4x324xf32>
    tpu.vector_store %arg11[%c0_61, %c0_62], %52 {strides = array<i32>} : memref<4x324xf32, #tpu.memory_space<vmem>>, vector<4x324xf32>,
    %c7 = arith.constant 7 : index
    %c0_63 = arith.constant 0 : index
    %c0_64 = arith.constant 0 : index
    %54 = vector.load %arg7[%c7, %c0_63, %c0_64] : memref<9x4x4xbf16, #tpu.memory_space<vmem>>, vector<1x4x4xbf16>
    %55 = vector.shape_cast %54 : vector<1x4x4xbf16> to vector<4x4xbf16>
    %c0_65 = arith.constant 0 : index
    %c165 = arith.constant 165 : index
    %56 = vector.load %arg10[%c0_65, %c165] : memref<4x512xbf16, #tpu.memory_space<vmem>>, vector<4x324xbf16>
    %cst_66 = arith.constant dense<0.000000e+00> : vector<4x324xf32>
    %57 = tpu.matmul %55, %56, %cst_66 {dimension_numbers = #tpu.dot_dimension_numbers<[1], [0], [0], [1], [0, 0, 1, 1], [], []>} : vector<4x4xbf16>, vector<4x324xbf16>, vector<4x324xf32> -> vector<4x324xf32>
    %c0_67 = arith.constant 0 : index
    %c0_68 = arith.constant 0 : index
    %58 = vector.load %arg11[%c0_67, %c0_68] : memref<4x324xf32, #tpu.memory_space<vmem>>, vector<4x324xf32>
    %59 = arith.addf %58, %57 : vector<4x324xf32>
    %c0_69 = arith.constant 0 : index
    %c0_70 = arith.constant 0 : index
    %60 = vector.load %arg11[%c0_69, %c0_70] : memref<4x324xf32, #tpu.memory_space<vmem>>, vector<4x324xf32>
    tpu.vector_store %arg11[%c0_69, %c0_70], %59 {strides = array<i32>} : memref<4x324xf32, #tpu.memory_space<vmem>>, vector<4x324xf32>,
    %c8 = arith.constant 8 : index
    %c0_71 = arith.constant 0 : index
    %c0_72 = arith.constant 0 : index
    %61 = vector.load %arg7[%c8, %c0_71, %c0_72] : memref<9x4x4xbf16, #tpu.memory_space<vmem>>, vector<1x4x4xbf16>
    %62 = vector.shape_cast %61 : vector<1x4x4xbf16> to vector<4x4xbf16>
    %c0_73 = arith.constant 0 : index
    %c166 = arith.constant 166 : index
    %63 = vector.load %arg10[%c0_73, %c166] : memref<4x512xbf16, #tpu.memory_space<vmem>>, vector<4x324xbf16>
    %cst_74 = arith.constant dense<0.000000e+00> : vector<4x324xf32>
    %64 = tpu.matmul %62, %63, %cst_74 {dimension_numbers = #tpu.dot_dimension_numbers<[1], [0], [0], [1], [0, 0, 1, 1], [], []>} : vector<4x4xbf16>, vector<4x324xbf16>, vector<4x324xf32> -> vector<4x324xf32>
    %c0_75 = arith.constant 0 : index
    %c0_76 = arith.constant 0 : index
    %65 = vector.load %arg11[%c0_75, %c0_76] : memref<4x324xf32, #tpu.memory_space<vmem>>, vector<4x324xf32>
    %66 = arith.addf %65, %64 : vector<4x324xf32>
    %c0_77 = arith.constant 0 : index
    %c0_78 = arith.constant 0 : index
    %67 = vector.load %arg11[%c0_77, %c0_78] : memref<4x324xf32, #tpu.memory_space<vmem>>, vector<4x324xf32>
    tpu.vector_store %arg11[%c0_77, %c0_78], %66 {strides = array<i32>} : memref<4x324xf32, #tpu.memory_space<vmem>>, vector<4x324xf32>,
    %c0_79 = arith.constant 0 : index
    %c0_80 = arith.constant 0 : index
    %68 = vector.load %arg11[%c0_79, %c0_80] : memref<4x324xf32, #tpu.memory_space<vmem>>, vector<4x324xf32>
    %69 = vector.broadcast %0 : vector<1x324xf32> to vector<4x324xf32>
    %70 = arith.mulf %68, %69 : vector<4x324xf32>
    %cst_81 = arith.constant dense<0.000000e+00> : vector<4xf32>
    %71 = vector.multi_reduction <add>, %70, %cst_81 [1] : vector<4x324xf32> to vector<4xf32>
    %72 = vector.shape_cast %71 : vector<4xf32> to vector<4x1xf32>
    %cst_82 = arith.constant 3.906250e-03 : f32
    %73 = vector.broadcast %cst_82 : f32 to vector<4x1xf32>
    %74 = arith.mulf %72, %73 : vector<4x1xf32>
    %75 = vector.broadcast %74 : vector<4x1xf32> to vector<4x324xf32>
    %76 = arith.subf %68, %75 : vector<4x324xf32>
    %77 = vector.broadcast %0 : vector<1x324xf32> to vector<4x324xf32>
    %78 = arith.mulf %76, %77 : vector<4x324xf32>
    %79 = arith.mulf %78, %78 : vector<4x324xf32>
    %cst_83 = arith.constant dense<0.000000e+00> : vector<4xf32>
    %80 = vector.multi_reduction <add>, %79, %cst_83 [1] : vector<4x324xf32> to vector<4xf32>
    %81 = vector.shape_cast %80 : vector<4xf32> to vector<4x1xf32>
    %cst_84 = arith.constant 3.906250e-03 : f32
    %82 = vector.broadcast %cst_84 : f32 to vector<4x1xf32>
    %83 = arith.mulf %81, %82 : vector<4x1xf32>
    %cst_85 = arith.constant 9.99999974E-6 : f32
    %84 = vector.broadcast %cst_85 : f32 to vector<4x1xf32>
    %85 = arith.addf %83, %84 : vector<4x1xf32>
    %86 = math.rsqrt %85 : vector<4x1xf32>
    %87 = vector.broadcast %86 : vector<4x1xf32> to vector<4x324xf32>
    %88 = arith.mulf %78, %87 : vector<4x324xf32>
    %cst_86 = arith.constant 0.000000e+00 : f32
    %89 = vector.broadcast %cst_86 : f32 to vector<4x324xf32>
    %90 = arith.maximumf %88, %89 : vector<4x324xf32>
    %91 = arith.truncf %90 : vector<4x324xf32> to vector<4x324xbf16>
    %c0_87 = arith.constant 0 : index
    %c128_88 = arith.constant 128 : index
    %92 = vector.load %arg10[%c0_87, %c128_88] : memref<4x512xbf16, #tpu.memory_space<vmem>>, vector<4x324xbf16>
    tpu.vector_store %arg10[%c0_87, %c128_88], %91 {strides = array<i32>} : memref<4x512xbf16, #tpu.memory_space<vmem>>, vector<4x324xbf16>,
    %c0_89 = arith.constant 0 : index
    %c0_90 = arith.constant 0 : index
    %93 = vector.load %arg2[%c0_89, %c0_90] : memref<1x324xf32, #tpu.memory_space<vmem>>, vector<1x324xf32>
    %94 = arith.truncf %93 : vector<1x324xf32> to vector<1x324xbf16>
    %c0_91 = arith.constant 0 : index
    %c0_92 = arith.constant 0 : index
    %95 = vector.load %arg3[%c0_91, %c0_92] : memref<1x324xf32, #tpu.memory_space<vmem>>, vector<1x324xf32>
    %96 = arith.truncf %95 : vector<1x324xf32> to vector<1x324xbf16>
    %c0_93 = arith.constant 0 : index
    %c0_94 = arith.constant 0 : index
    %97 = vector.load %arg4[%c0_93, %c0_94] : memref<1x324xf32, #tpu.memory_space<vmem>>, vector<1x324xf32>
    %98 = arith.truncf %97 : vector<1x324xf32> to vector<1x324xbf16>
    %c0_95 = arith.constant 0 : index
    %c0_96 = arith.constant 0 : index
    %99 = vector.load %arg5[%c0_95, %c0_96] : memref<1x324xf32, #tpu.memory_space<vmem>>, vector<1x324xf32>
    %100 = arith.truncf %99 : vector<1x324xf32> to vector<1x324xbf16>
    %c0_97 = arith.constant 0 : index
    %c127 = arith.constant 127 : index
    %101 = vector.load %arg10[%c0_97, %c127] : memref<4x512xbf16, #tpu.memory_space<vmem>>, vector<4x324xbf16>
    %c0_98 = arith.constant 0 : index
    %c129_99 = arith.constant 129 : index
    %102 = vector.load %arg10[%c0_98, %c129_99] : memref<4x512xbf16, #tpu.memory_space<vmem>>, vector<4x324xbf16>
    %c0_100 = arith.constant 0 : index
    %c125 = arith.constant 125 : index
    %103 = vector.load %arg10[%c0_100, %c125] : memref<4x512xbf16, #tpu.memory_space<vmem>>, vector<4x324xbf16>
    %104 = vector.broadcast %94 : vector<1x324xbf16> to vector<4x324xbf16>
    %105 = arith.mulf %104, %102 : vector<4x324xbf16>
    %106 = arith.addf %101, %105 : vector<4x324xbf16>
    %107 = vector.broadcast %96 : vector<1x324xbf16> to vector<4x324xbf16>
    %108 = arith.mulf %107, %103 : vector<4x324xbf16>
    %109 = arith.addf %106, %108 : vector<4x324xbf16>
    %c0_101 = arith.constant 0 : index
    %c128_102 = arith.constant 128 : index
    %110 = vector.load %arg10[%c0_101, %c128_102] : memref<4x512xbf16, #tpu.memory_space<vmem>>, vector<4x324xbf16>
    tpu.vector_store %arg10[%c0_101, %c128_102], %109 {strides = array<i32>} : memref<4x512xbf16, #tpu.memory_space<vmem>>, vector<4x324xbf16>,
    %c0_103 = arith.constant 0 : index
    %c110 = arith.constant 110 : index
    %111 = vector.load %arg10[%c0_103, %c110] : memref<4x512xbf16, #tpu.memory_space<vmem>>, vector<4x324xbf16>
    %c0_104 = arith.constant 0 : index
    %c146_105 = arith.constant 146 : index
    %112 = vector.load %arg10[%c0_104, %c146_105] : memref<4x512xbf16, #tpu.memory_space<vmem>>, vector<4x324xbf16>
    %c0_106 = arith.constant 0 : index
    %c74 = arith.constant 74 : index
    %113 = vector.load %arg10[%c0_106, %c74] : memref<4x512xbf16, #tpu.memory_space<vmem>>, vector<4x324xbf16>
    %114 = vector.broadcast %98 : vector<1x324xbf16> to vector<4x324xbf16>
    %115 = arith.mulf %114, %112 : vector<4x324xbf16>
    %116 = arith.addf %111, %115 : vector<4x324xbf16>
    %117 = vector.broadcast %100 : vector<1x324xbf16> to vector<4x324xbf16>
    %118 = arith.mulf %117, %113 : vector<4x324xbf16>
    %119 = arith.addf %116, %118 : vector<4x324xbf16>
    %c0_107 = arith.constant 0 : index
    %c128_108 = arith.constant 128 : index
    %120 = vector.load %arg10[%c0_107, %c128_108] : memref<4x512xbf16, #tpu.memory_space<vmem>>, vector<4x324xbf16>
    tpu.vector_store %arg10[%c0_107, %c128_108], %119 {strides = array<i32>} : memref<4x512xbf16, #tpu.memory_space<vmem>>, vector<4x324xbf16>,
    %c0_109 = arith.constant 0 : index
    %c0_110 = arith.constant 0 : index
    %c0_111 = arith.constant 0 : index
    %121 = vector.load %arg8[%c0_109, %c0_110, %c0_111] : memref<9x4x4xbf16, #tpu.memory_space<vmem>>, vector<1x4x4xbf16>
    %122 = vector.shape_cast %121 : vector<1x4x4xbf16> to vector<4x4xbf16>
    %c0_112 = arith.constant 0 : index
    %c128_113 = arith.constant 128 : index
    %123 = vector.load %arg10[%c0_112, %c128_113] : memref<4x512xbf16, #tpu.memory_space<vmem>>, vector<4x324xbf16>
    %cst_114 = arith.constant dense<0.000000e+00> : vector<4x324xf32>
    %124 = tpu.matmul %122, %123, %cst_114 {dimension_numbers = #tpu.dot_dimension_numbers<[1], [0], [0], [1], [0, 0, 1, 1], [], []>} : vector<4x4xbf16>, vector<4x324xbf16>, vector<4x324xf32> -> vector<4x324xf32>
    %c0_115 = arith.constant 0 : index
    %c0_116 = arith.constant 0 : index
    %125 = vector.load %arg11[%c0_115, %c0_116] : memref<4x324xf32, #tpu.memory_space<vmem>>, vector<4x324xf32>
    tpu.vector_store %arg11[%c0_115, %c0_116], %124 {strides = array<i32>} : memref<4x324xf32, #tpu.memory_space<vmem>>, vector<4x324xf32>,
    %c1_117 = arith.constant 1 : index
    %c0_118 = arith.constant 0 : index
    %c0_119 = arith.constant 0 : index
    %126 = vector.load %arg8[%c1_117, %c0_118, %c0_119] : memref<9x4x4xbf16, #tpu.memory_space<vmem>>, vector<1x4x4xbf16>
    %127 = vector.shape_cast %126 : vector<1x4x4xbf16> to vector<4x4xbf16>
    %c0_120 = arith.constant 0 : index
    %c129_121 = arith.constant 129 : index
    %128 = vector.load %arg10[%c0_120, %c129_121] : memref<4x512xbf16, #tpu.memory_space<vmem>>, vector<4x324xbf16>
    %cst_122 = arith.constant dense<0.000000e+00> : vector<4x324xf32>
    %129 = tpu.matmul %127, %128, %cst_122 {dimension_numbers = #tpu.dot_dimension_numbers<[1], [0], [0], [1], [0, 0, 1, 1], [], []>} : vector<4x4xbf16>, vector<4x324xbf16>, vector<4x324xf32> -> vector<4x324xf32>
    %c0_123 = arith.constant 0 : index
    %c0_124 = arith.constant 0 : index
    %130 = vector.load %arg11[%c0_123, %c0_124] : memref<4x324xf32, #tpu.memory_space<vmem>>, vector<4x324xf32>
    %131 = arith.addf %130, %129 : vector<4x324xf32>
    %c0_125 = arith.constant 0 : index
    %c0_126 = arith.constant 0 : index
    %132 = vector.load %arg11[%c0_125, %c0_126] : memref<4x324xf32, #tpu.memory_space<vmem>>, vector<4x324xf32>
    tpu.vector_store %arg11[%c0_125, %c0_126], %131 {strides = array<i32>} : memref<4x324xf32, #tpu.memory_space<vmem>>, vector<4x324xf32>,
    %c2_127 = arith.constant 2 : index
    %c0_128 = arith.constant 0 : index
    %c0_129 = arith.constant 0 : index
    %133 = vector.load %arg8[%c2_127, %c0_128, %c0_129] : memref<9x4x4xbf16, #tpu.memory_space<vmem>>, vector<1x4x4xbf16>
    %134 = vector.shape_cast %133 : vector<1x4x4xbf16> to vector<4x4xbf16>
    %c0_130 = arith.constant 0 : index
    %c130_131 = arith.constant 130 : index
    %135 = vector.load %arg10[%c0_130, %c130_131] : memref<4x512xbf16, #tpu.memory_space<vmem>>, vector<4x324xbf16>
    %cst_132 = arith.constant dense<0.000000e+00> : vector<4x324xf32>
    %136 = tpu.matmul %134, %135, %cst_132 {dimension_numbers = #tpu.dot_dimension_numbers<[1], [0], [0], [1], [0, 0, 1, 1], [], []>} : vector<4x4xbf16>, vector<4x324xbf16>, vector<4x324xf32> -> vector<4x324xf32>
    %c0_133 = arith.constant 0 : index
    %c0_134 = arith.constant 0 : index
    %137 = vector.load %arg11[%c0_133, %c0_134] : memref<4x324xf32, #tpu.memory_space<vmem>>, vector<4x324xf32>
    %138 = arith.addf %137, %136 : vector<4x324xf32>
    %c0_135 = arith.constant 0 : index
    %c0_136 = arith.constant 0 : index
    %139 = vector.load %arg11[%c0_135, %c0_136] : memref<4x324xf32, #tpu.memory_space<vmem>>, vector<4x324xf32>
    tpu.vector_store %arg11[%c0_135, %c0_136], %138 {strides = array<i32>} : memref<4x324xf32, #tpu.memory_space<vmem>>, vector<4x324xf32>,
    %c3_137 = arith.constant 3 : index
    %c0_138 = arith.constant 0 : index
    %c0_139 = arith.constant 0 : index
    %140 = vector.load %arg8[%c3_137, %c0_138, %c0_139] : memref<9x4x4xbf16, #tpu.memory_space<vmem>>, vector<1x4x4xbf16>
    %141 = vector.shape_cast %140 : vector<1x4x4xbf16> to vector<4x4xbf16>
    %c0_140 = arith.constant 0 : index
    %c146_141 = arith.constant 146 : index
    %142 = vector.load %arg10[%c0_140, %c146_141] : memref<4x512xbf16, #tpu.memory_space<vmem>>, vector<4x324xbf16>
    %cst_142 = arith.constant dense<0.000000e+00> : vector<4x324xf32>
    %143 = tpu.matmul %141, %142, %cst_142 {dimension_numbers = #tpu.dot_dimension_numbers<[1], [0], [0], [1], [0, 0, 1, 1], [], []>} : vector<4x4xbf16>, vector<4x324xbf16>, vector<4x324xf32> -> vector<4x324xf32>
    %c0_143 = arith.constant 0 : index
    %c0_144 = arith.constant 0 : index
    %144 = vector.load %arg11[%c0_143, %c0_144] : memref<4x324xf32, #tpu.memory_space<vmem>>, vector<4x324xf32>
    %145 = arith.addf %144, %143 : vector<4x324xf32>
    %c0_145 = arith.constant 0 : index
    %c0_146 = arith.constant 0 : index
    %146 = vector.load %arg11[%c0_145, %c0_146] : memref<4x324xf32, #tpu.memory_space<vmem>>, vector<4x324xf32>
    tpu.vector_store %arg11[%c0_145, %c0_146], %145 {strides = array<i32>} : memref<4x324xf32, #tpu.memory_space<vmem>>, vector<4x324xf32>,
    %c4_147 = arith.constant 4 : index
    %c0_148 = arith.constant 0 : index
    %c0_149 = arith.constant 0 : index
    %147 = vector.load %arg8[%c4_147, %c0_148, %c0_149] : memref<9x4x4xbf16, #tpu.memory_space<vmem>>, vector<1x4x4xbf16>
    %148 = vector.shape_cast %147 : vector<1x4x4xbf16> to vector<4x4xbf16>
    %c0_150 = arith.constant 0 : index
    %c147_151 = arith.constant 147 : index
    %149 = vector.load %arg10[%c0_150, %c147_151] : memref<4x512xbf16, #tpu.memory_space<vmem>>, vector<4x324xbf16>
    %cst_152 = arith.constant dense<0.000000e+00> : vector<4x324xf32>
    %150 = tpu.matmul %148, %149, %cst_152 {dimension_numbers = #tpu.dot_dimension_numbers<[1], [0], [0], [1], [0, 0, 1, 1], [], []>} : vector<4x4xbf16>, vector<4x324xbf16>, vector<4x324xf32> -> vector<4x324xf32>
    %c0_153 = arith.constant 0 : index
    %c0_154 = arith.constant 0 : index
    %151 = vector.load %arg11[%c0_153, %c0_154] : memref<4x324xf32, #tpu.memory_space<vmem>>, vector<4x324xf32>
    %152 = arith.addf %151, %150 : vector<4x324xf32>
    %c0_155 = arith.constant 0 : index
    %c0_156 = arith.constant 0 : index
    %153 = vector.load %arg11[%c0_155, %c0_156] : memref<4x324xf32, #tpu.memory_space<vmem>>, vector<4x324xf32>
    tpu.vector_store %arg11[%c0_155, %c0_156], %152 {strides = array<i32>} : memref<4x324xf32, #tpu.memory_space<vmem>>, vector<4x324xf32>,
    %c5_157 = arith.constant 5 : index
    %c0_158 = arith.constant 0 : index
    %c0_159 = arith.constant 0 : index
    %154 = vector.load %arg8[%c5_157, %c0_158, %c0_159] : memref<9x4x4xbf16, #tpu.memory_space<vmem>>, vector<1x4x4xbf16>
    %155 = vector.shape_cast %154 : vector<1x4x4xbf16> to vector<4x4xbf16>
    %c0_160 = arith.constant 0 : index
    %c148_161 = arith.constant 148 : index
    %156 = vector.load %arg10[%c0_160, %c148_161] : memref<4x512xbf16, #tpu.memory_space<vmem>>, vector<4x324xbf16>
    %cst_162 = arith.constant dense<0.000000e+00> : vector<4x324xf32>
    %157 = tpu.matmul %155, %156, %cst_162 {dimension_numbers = #tpu.dot_dimension_numbers<[1], [0], [0], [1], [0, 0, 1, 1], [], []>} : vector<4x4xbf16>, vector<4x324xbf16>, vector<4x324xf32> -> vector<4x324xf32>
    %c0_163 = arith.constant 0 : index
    %c0_164 = arith.constant 0 : index
    %158 = vector.load %arg11[%c0_163, %c0_164] : memref<4x324xf32, #tpu.memory_space<vmem>>, vector<4x324xf32>
    %159 = arith.addf %158, %157 : vector<4x324xf32>
    %c0_165 = arith.constant 0 : index
    %c0_166 = arith.constant 0 : index
    %160 = vector.load %arg11[%c0_165, %c0_166] : memref<4x324xf32, #tpu.memory_space<vmem>>, vector<4x324xf32>
    tpu.vector_store %arg11[%c0_165, %c0_166], %159 {strides = array<i32>} : memref<4x324xf32, #tpu.memory_space<vmem>>, vector<4x324xf32>,
    %c6_167 = arith.constant 6 : index
    %c0_168 = arith.constant 0 : index
    %c0_169 = arith.constant 0 : index
    %161 = vector.load %arg8[%c6_167, %c0_168, %c0_169] : memref<9x4x4xbf16, #tpu.memory_space<vmem>>, vector<1x4x4xbf16>
    %162 = vector.shape_cast %161 : vector<1x4x4xbf16> to vector<4x4xbf16>
    %c0_170 = arith.constant 0 : index
    %c164_171 = arith.constant 164 : index
    %163 = vector.load %arg10[%c0_170, %c164_171] : memref<4x512xbf16, #tpu.memory_space<vmem>>, vector<4x324xbf16>
    %cst_172 = arith.constant dense<0.000000e+00> : vector<4x324xf32>
    %164 = tpu.matmul %162, %163, %cst_172 {dimension_numbers = #tpu.dot_dimension_numbers<[1], [0], [0], [1], [0, 0, 1, 1], [], []>} : vector<4x4xbf16>, vector<4x324xbf16>, vector<4x324xf32> -> vector<4x324xf32>
    %c0_173 = arith.constant 0 : index
    %c0_174 = arith.constant 0 : index
    %165 = vector.load %arg11[%c0_173, %c0_174] : memref<4x324xf32, #tpu.memory_space<vmem>>, vector<4x324xf32>
    %166 = arith.addf %165, %164 : vector<4x324xf32>
    %c0_175 = arith.constant 0 : index
    %c0_176 = arith.constant 0 : index
    %167 = vector.load %arg11[%c0_175, %c0_176] : memref<4x324xf32, #tpu.memory_space<vmem>>, vector<4x324xf32>
    tpu.vector_store %arg11[%c0_175, %c0_176], %166 {strides = array<i32>} : memref<4x324xf32, #tpu.memory_space<vmem>>, vector<4x324xf32>,
    %c7_177 = arith.constant 7 : index
    %c0_178 = arith.constant 0 : index
    %c0_179 = arith.constant 0 : index
    %168 = vector.load %arg8[%c7_177, %c0_178, %c0_179] : memref<9x4x4xbf16, #tpu.memory_space<vmem>>, vector<1x4x4xbf16>
    %169 = vector.shape_cast %168 : vector<1x4x4xbf16> to vector<4x4xbf16>
    %c0_180 = arith.constant 0 : index
    %c165_181 = arith.constant 165 : index
    %170 = vector.load %arg10[%c0_180, %c165_181] : memref<4x512xbf16, #tpu.memory_space<vmem>>, vector<4x324xbf16>
    %cst_182 = arith.constant dense<0.000000e+00> : vector<4x324xf32>
    %171 = tpu.matmul %169, %170, %cst_182 {dimension_numbers = #tpu.dot_dimension_numbers<[1], [0], [0], [1], [0, 0, 1, 1], [], []>} : vector<4x4xbf16>, vector<4x324xbf16>, vector<4x324xf32> -> vector<4x324xf32>
    %c0_183 = arith.constant 0 : index
    %c0_184 = arith.constant 0 : index
    %172 = vector.load %arg11[%c0_183, %c0_184] : memref<4x324xf32, #tpu.memory_space<vmem>>, vector<4x324xf32>
    %173 = arith.addf %172, %171 : vector<4x324xf32>
    %c0_185 = arith.constant 0 : index
    %c0_186 = arith.constant 0 : index
    %174 = vector.load %arg11[%c0_185, %c0_186] : memref<4x324xf32, #tpu.memory_space<vmem>>, vector<4x324xf32>
    tpu.vector_store %arg11[%c0_185, %c0_186], %173 {strides = array<i32>} : memref<4x324xf32, #tpu.memory_space<vmem>>, vector<4x324xf32>,
    %c8_187 = arith.constant 8 : index
    %c0_188 = arith.constant 0 : index
    %c0_189 = arith.constant 0 : index
    %175 = vector.load %arg8[%c8_187, %c0_188, %c0_189] : memref<9x4x4xbf16, #tpu.memory_space<vmem>>, vector<1x4x4xbf16>
    %176 = vector.shape_cast %175 : vector<1x4x4xbf16> to vector<4x4xbf16>
    %c0_190 = arith.constant 0 : index
    %c166_191 = arith.constant 166 : index
    %177 = vector.load %arg10[%c0_190, %c166_191] : memref<4x512xbf16, #tpu.memory_space<vmem>>, vector<4x324xbf16>
    %cst_192 = arith.constant dense<0.000000e+00> : vector<4x324xf32>
    %178 = tpu.matmul %176, %177, %cst_192 {dimension_numbers = #tpu.dot_dimension_numbers<[1], [0], [0], [1], [0, 0, 1, 1], [], []>} : vector<4x4xbf16>, vector<4x324xbf16>, vector<4x324xf32> -> vector<4x324xf32>
    %c0_193 = arith.constant 0 : index
    %c0_194 = arith.constant 0 : index
    %179 = vector.load %arg11[%c0_193, %c0_194] : memref<4x324xf32, #tpu.memory_space<vmem>>, vector<4x324xf32>
    %180 = arith.addf %179, %178 : vector<4x324xf32>
    %c0_195 = arith.constant 0 : index
    %c0_196 = arith.constant 0 : index
    %181 = vector.load %arg11[%c0_195, %c0_196] : memref<4x324xf32, #tpu.memory_space<vmem>>, vector<4x324xf32>
    tpu.vector_store %arg11[%c0_195, %c0_196], %180 {strides = array<i32>} : memref<4x324xf32, #tpu.memory_space<vmem>>, vector<4x324xf32>,
    %c0_197 = arith.constant 0 : index
    %c0_198 = arith.constant 0 : index
    %182 = vector.load %arg11[%c0_197, %c0_198] : memref<4x324xf32, #tpu.memory_space<vmem>>, vector<4x324xf32>
    %183 = vector.broadcast %0 : vector<1x324xf32> to vector<4x324xf32>
    %184 = arith.mulf %182, %183 : vector<4x324xf32>
    %cst_199 = arith.constant dense<0.000000e+00> : vector<4xf32>
    %185 = vector.multi_reduction <add>, %184, %cst_199 [1] : vector<4x324xf32> to vector<4xf32>
    %186 = vector.shape_cast %185 : vector<4xf32> to vector<4x1xf32>
    %cst_200 = arith.constant 3.906250e-03 : f32
    %187 = vector.broadcast %cst_200 : f32 to vector<4x1xf32>
    %188 = arith.mulf %186, %187 : vector<4x1xf32>
    %189 = vector.broadcast %188 : vector<4x1xf32> to vector<4x324xf32>
    %190 = arith.subf %182, %189 : vector<4x324xf32>
    %191 = vector.broadcast %0 : vector<1x324xf32> to vector<4x324xf32>
    %192 = arith.mulf %190, %191 : vector<4x324xf32>
    %193 = arith.mulf %192, %192 : vector<4x324xf32>
    %cst_201 = arith.constant dense<0.000000e+00> : vector<4xf32>
    %194 = vector.multi_reduction <add>, %193, %cst_201 [1] : vector<4x324xf32> to vector<4xf32>
    %195 = vector.shape_cast %194 : vector<4xf32> to vector<4x1xf32>
    %cst_202 = arith.constant 3.906250e-03 : f32
    %196 = vector.broadcast %cst_202 : f32 to vector<4x1xf32>
    %197 = arith.mulf %195, %196 : vector<4x1xf32>
    %cst_203 = arith.constant 9.99999974E-6 : f32
    %198 = vector.broadcast %cst_203 : f32 to vector<4x1xf32>
    %199 = arith.addf %197, %198 : vector<4x1xf32>
    %200 = math.rsqrt %199 : vector<4x1xf32>
    %201 = vector.broadcast %200 : vector<4x1xf32> to vector<4x324xf32>
    %202 = arith.mulf %192, %201 : vector<4x324xf32>
    %c0_204 = arith.constant 0 : index
    %c0_205 = arith.constant 0 : index
    %c19 = arith.constant 19 : index
    %203 = vector.load %arg6[%c0_204, %c0_205, %c19] : memref<1x4x384xf32, #tpu.memory_space<vmem>>, vector<1x4x324xf32>
    %204 = vector.shape_cast %203 : vector<1x4x324xf32> to vector<4x324xf32>
    %205 = arith.addf %204, %202 : vector<4x324xf32>
    %c0_206 = arith.constant 0 : index
    %c0_207 = arith.constant 0 : index
    %c0_208 = arith.constant 0 : index
    %206 = vector.load %arg9[%c0_206, %c0_207, %c0_208] : memref<1x4x384xf32, #tpu.memory_space<vmem>>, vector<1x4x324xf32>
    %207 = vector.shape_cast %206 : vector<1x4x324xf32> to vector<4x324xf32>
    %208 = vector.shape_cast %205 : vector<4x324xf32> to vector<1x4x324xf32>
    tpu.vector_store %arg9[%c0_206, %c0_207, %c0_208], %208 {strides = array<i32>} : memref<1x4x384xf32, #tpu.memory_space<vmem>>, vector<1x4x324xf32>,
    %cst_209 = arith.constant 0.000000e+00 : f32
    %209 = vector.broadcast %cst_209 : f32 to vector<4x60xf32>
    %c0_210 = arith.constant 0 : index
    %c0_211 = arith.constant 0 : index
    %c324 = arith.constant 324 : index
    %210 = vector.load %arg9[%c0_210, %c0_211, %c324] : memref<1x4x384xf32, #tpu.memory_space<vmem>>, vector<1x4x60xf32>
    %211 = vector.shape_cast %210 : vector<1x4x60xf32> to vector<4x60xf32>
    %212 = vector.shape_cast %209 : vector<4x60xf32> to vector<1x4x60xf32>
    tpu.vector_store %arg9[%c0_210, %c0_211, %c324], %212 {strides = array<i32>} : memref<1x4x384xf32, #tpu.memory_space<vmem>>, vector<1x4x60xf32>,
    return
  }
  func.func @transform_0(%arg0: i32) -> (i32, i32) {
    %c0_i32 = arith.constant 0 : i32
    %c0_i32_0 = arith.constant 0 : i32
    %c0_i32_1 = arith.constant 0 : i32
    return %c0_i32, %c0_i32_0 : i32, i32
  }
  func.func @transform_1(%arg0: i32) -> (i32, i32) {
    %c0_i32 = arith.constant 0 : i32
    %c0_i32_0 = arith.constant 0 : i32
    %c0_i32_1 = arith.constant 0 : i32
    return %c0_i32, %c0_i32_0 : i32, i32
  }
  func.func @transform_2(%arg0: i32) -> (i32, i32) {
    %c0_i32 = arith.constant 0 : i32
    %c0_i32_0 = arith.constant 0 : i32
    %c0_i32_1 = arith.constant 0 : i32
    return %c0_i32, %c0_i32_0 : i32, i32
  }
  func.func @transform_3(%arg0: i32) -> (i32, i32) {
    %c0_i32 = arith.constant 0 : i32
    %c0_i32_0 = arith.constant 0 : i32
    %c0_i32_1 = arith.constant 0 : i32
    return %c0_i32, %c0_i32_0 : i32, i32
  }
  func.func @transform_4(%arg0: i32) -> (i32, i32) {
    %c0_i32 = arith.constant 0 : i32
    %c0_i32_0 = arith.constant 0 : i32
    %c0_i32_1 = arith.constant 0 : i32
    return %c0_i32, %c0_i32_0 : i32, i32
  }
  func.func @transform_5(%arg0: i32) -> (i32, i32, i32) {
    %c0_i32 = arith.constant 0 : i32
    %c0_i32_0 = arith.constant 0 : i32
    %c0_i32_1 = arith.constant 0 : i32
    return %arg0, %c0_i32, %c0_i32_0 : i32, i32, i32
  }
  func.func @transform_6(%arg0: i32) -> (i32, i32, i32) {
    %c0_i32 = arith.constant 0 : i32
    %c0_i32_0 = arith.constant 0 : i32
    %c0_i32_1 = arith.constant 0 : i32
    %c0_i32_2 = arith.constant 0 : i32
    return %c0_i32, %c0_i32_0, %c0_i32_1 : i32, i32, i32
  }
  func.func @transform_7(%arg0: i32) -> (i32, i32, i32) {
    %c0_i32 = arith.constant 0 : i32
    %c0_i32_0 = arith.constant 0 : i32
    %c0_i32_1 = arith.constant 0 : i32
    %c0_i32_2 = arith.constant 0 : i32
    return %c0_i32, %c0_i32_0, %c0_i32_1 : i32, i32, i32
  }
  func.func @transform_8(%arg0: i32) -> (i32, i32, i32) {
    %c0_i32 = arith.constant 0 : i32
    %c0_i32_0 = arith.constant 0 : i32
    %c0_i32_1 = arith.constant 0 : i32
    return %arg0, %c0_i32, %c0_i32_0 : i32, i32, i32
  }
}

</mosaic_0001>

<bundles_post_ra>
// kernel: residual_block.1
= control target key start
LH: loop header
LB: loop body
LE: loop exit
PB: predicated region body
PF: predicated region fallthrough
CT: control target
= control target key end

     0   :  { %s5130_s0 = inlined_call_operand.hbm [shape: f32[1,324], index: 0, kind: input, shape index: {}]   ;;  %s5131_s1 = inlined_call_operand.hbm [shape: f32[1,324], index: 1, kind: input, shape index: {}]   ;;  %s5132_s2 = inlined_call_operand.hbm [shape: f32[1,324], index: 2, kind: input, shape index: {}]   ;;  %s5133_s3 = inlined_call_operand.hbm [shape: f32[1,324], index: 3, kind: input, shape index: {}]   ;;  %s5134_s4 = inlined_call_operand.hbm [shape: f32[1,324], index: 4, kind: input, shape index: {}]   ;;  %s5135_s5 = inlined_call_operand.hbm [shape: f32[2,4,384], index: 5, kind: input, shape index: {}]   ;;  %s5136_s6 = inlined_call_operand.hbm [shape: bf16[9,4,4], index: 6, kind: input, shape index: {}]   ;;  %s5137_s7 = inlined_call_operand.hbm [shape: bf16[9,4,4], index: 7, kind: input, shape index: {}]   ;;  %s5138_s8 = inlined_call_operand.hbm [shape: f32[2,4,384], index: 8, kind: output, shape index: {}]  }
   0x1   :  { %5143 = sst [smem:[#allocation26_spill]] %s5131_s1 }
   0x2   :  { %5144 = sst [smem:[#allocation27_spill]] %s5133_s3 }
   0x3   :  { %13 = vsyncpa [#allocation5], 0 }
   0x4   :  { %14 = vsyncpa [#allocation8], 0 }
   0x5   :  { %15 = vsyncpa [#allocation11], 0 }
   0x6   :  { %16 = vsyncpa [#allocation14], 0 }
   0x7   :  { %18 = vsyncpa [#allocation14 + $0x1], 0 }
   0x8   :  { %19 = vsyncpa [#allocation17], 0 }
   0x9   :  { %20 = vsyncpa [#allocation6], 0 }
   0xa   :  { %22 = vsyncpa [#allocation6 + $0x1], 0  ;;  %s4329_s27 = smov 0   ;;  %s4331_s28 = smov 0  }
   0xb   :  { %s4333_s29 = smov 0   ;;  %s4335_s30 = smov 0  }
   0xc LB: > { %s4255_s9 = smov [#allocation7]   ;;  %s4350_s11 = sadd.s32 4294967295, %s4253_s30   ;;  %s4253_s30 = sphi %s4335_s30, %s5179_s30   ;;  %s4249_s29 = sphi %s4333_s29, %s5178_s29   ;;  %s4245_s28 = sphi %s4331_s28, %s5177_s28   ;;  %s4241_s27 = sphi %s4329_s27, %s5176_s27  }
   0xd   : > { %s256_s10 = sshll.u32 %s4255_s9, 4  ;;  %p3553_p0 = scmp.ge.s32.totalorder %s4253_s30, 1  ;;  %s4355_s10 = int_to_ptr.vmem [resolvable:$true] %s256_s10 }
   0xe   : > { %p5139_p1 = scmp.eq.s32.totalorder %s4350_s11, 0  ;;  %p232_p2 = scmp.lt.s32.totalorder %s4253_s30, 3 }
   0xf   : > { %s4256_s13 = smov [#allocation10]   ;;  %s4257_s15 = smov [#allocation15]  }
  0x10   : > { %p4357_p3 = pnand %p3553_p0, %p232_p2  ;;  %s278_s14 = sshll.u32 %s4256_s13, 4  ;;  %s4364_s14 = int_to_ptr.vmem [resolvable:$true] %s278_s14 }
  0x11   : > { %s299_s16 = sshll.u32 %s4257_s15, 4  ;;  %s5147_s1 = sld [smem:[#allocation26_spill]]  ;;  %s4372_s16 = int_to_ptr.vmem [resolvable:$true] %s299_s16 }
  0x12   : > { %s5145_s12 = scalar_select %p4357_p3, 1, 0 }
  0x13   : > { %p3810_p5 = pneg %p4357_p3 }
  0x15   : > { %p4368_p6 = pnand %p3810_p5, %p5139_p1 }
  0x17   : > { %s3941_s20 = scalar_lea.hbm %s5147_s1, 48  ;;  %p4382_p8 = pneg %p4368_p6 }
  0x18   : > { %p3942_p7 = scmp.ne.s32.totalorder %s5147_s1, %s3941_s20  ;;  %p3948_p11 = scmp.lt.u32.totalorder %s3941_s20, %s5147_s1 }
  0x1a   : > { %p3944_p9 = pnand %p4382_p8, %p3942_p7 }
  0x1c   : > { %p3945_p10 = pneg %p3944_p9 }
  0x1e   : > { %p3950_p12 = pnand %p3948_p11, %p3945_p10 }
  0x20   : > { %3953 = shalt.err (!%p3950_p12)
}
  0x21   : > { %s3954_s26 = scalar_lea.vmem %s4355_s10, 48  ;;  %s3961_s9 = scalar_lea.vmem %s4355_s10, 64 }
  0x22   : > { %p3955_p13 = scmp.ne.s32.totalorder %s4355_s10, %s3954_s26  ;;  %p3962_p5 = scmp.lt.s32.totalorder %s4355_s10, %s4355_s10 }
  0x23   : > { %p3963_p7 = scmp.lt.s32.totalorder %s3961_s9, %s3954_s26 }
  0x24   : > { %p3957_p0 = pnand %p3955_p13, %p4382_p8 }
  0x25   : > { %p3964_p9 = por %p3963_p7, %p3962_p5 }
  0x26   : > { %p3958_p2 = pneg %p3957_p0 }
  0x28   : > { %p3965_p4 = pnand %p3964_p9, %p3958_p2 }
  0x2a   : > { %3968 = shalt.err (!%p3965_p4)
}
  0x2b   : > { %3816 = dma.hbm_to_vmem [thread:$0]  (!%p4368_p6), %s5147_s1, 48, %s4355_s10, [#allocation8]  }
  0x2c   : > { %s5149_s3 = sld [smem:[#allocation27_spill]] }
  0x32   : > { %s3969_s20 = scalar_lea.hbm %s5149_s3, 48 }
  0x33   : > { %p3970_p10 = scmp.ne.s32.totalorder %s5149_s3, %s3969_s20  ;;  %p3976_p4 = scmp.lt.u32.totalorder %s3969_s20, %s5149_s3 }
  0x35   : > { %p3972_p11 = pnand %p3970_p10, %p4382_p8 }
  0x37   : > { %p3973_p12 = pneg %p3972_p11 }
  0x39   : > { %p3978_p13 = pnand %p3976_p4, %p3973_p12 }
  0x3b   : > { %3981 = shalt.err (!%p3978_p13)
}
  0x3c   : > { %s3982_s10 = scalar_lea.vmem %s4364_s14, 48  ;;  %s3989_s26 = scalar_lea.vmem %s4364_s14, 64 }
  0x3d   : > { %p3983_p0 = scmp.ne.s32.totalorder %s4364_s14, %s3982_s10  ;;  %p3990_p7 = scmp.lt.s32.totalorder %s4364_s14, %s4364_s14 }
  0x3e   : > { %p3991_p9 = scmp.lt.s32.totalorder %s3989_s26, %s3982_s10 }
  0x3f   : > { %p3985_p2 = pnand %p3983_p0, %p4382_p8 }
  0x40   : > { %p3992_p10 = por %p3991_p9, %p3990_p7 }
  0x41   : > { %p3986_p5 = pneg %p3985_p2 }
  0x43   : > { %p3993_p11 = pnand %p3992_p10, %p3986_p5 }
  0x45   : > { %3996 = shalt.err (!%p3993_p11)
}
  0x46   : > { %3822 = dma.hbm_to_vmem [thread:$0]  (!%p4368_p6), %s5149_s3, 48, %s4364_s14, [#allocation11]  }
  0x47   : > { %s3997_s19 = scalar_lea.hbm %s5136_s6, 288 }
  0x48   : > { %p3998_p12 = scmp.ne.s32.totalorder %s5136_s6, %s3997_s19  ;;  %p4004_p0 = scmp.lt.u32.totalorder %s3997_s19, %s5136_s6 }
  0x4a   : > { %p4000_p4 = pnand %p3998_p12, %p4382_p8 }
  0x4c   : > { %p4001_p13 = pneg %p4000_p4 }
  0x4e   : > { %p4006_p2 = pnand %p4004_p0, %p4001_p13 }
  0x50   : > { %4009 = shalt.err (!%p4006_p2)
}
  0x51   : > { %s4010_s14 = scalar_lea.vmem %s4372_s16, 288  ;;  %p4018_p10 = scmp.lt.s32.totalorder %s4372_s16, %s4372_s16 }
  0x52   : > { %p4011_p5 = scmp.ne.s32.totalorder %s4372_s16, %s4010_s14  ;;  %p4019_p11 = scmp.lt.s32.totalorder %s4010_s14, %s4010_s14 }
  0x54   : > { %p4013_p7 = pnand %p4011_p5, %p4382_p8  ;;  %p4020_p12 = por %p4019_p11, %p4018_p10 }
  0x56   : > { %p4014_p9 = pneg %p4013_p7 }
  0x58   : > { %p4021_p4 = pnand %p4020_p12, %p4014_p9 }
  0x5a   : > { %4024 = shalt.err (!%p4021_p4)
}
  0x5b   : > { %s4258_s25 = smov 32   ;;  %s4259_s10 = smov 2  }
  0x5c   : > { %3828 = dma.hbm_to_vmem [thread:$0]  (!%p4368_p6), %s5136_s6, 288, %s4372_s16, [#allocation14], %s4258_s25, %s4258_s25, %s4259_s10  }
  0x5d   : > { %s4260_s13 = smov [#allocation4]   ;;  %s4261_s18 = smov [#allocation9]  }
  0x5e   : > { %s245_s15 = sshll.u32 %s4260_s13, 4  ;;  %s267_s19 = sshll.u32 %s4261_s18, 4  ;;  %s246_s15 = int_to_ptr.vmem [resolvable:$true] %s245_s15  ;;  %s268_s19 = int_to_ptr.vmem [resolvable:$true] %s267_s19 }
  0x5f   : > { %s4025_s22 = scalar_lea.hbm %s5130_s0, 48 }
  0x60   : > { %p4026_p13 = scmp.ne.s32.totalorder %s5130_s0, %s4025_s22  ;;  %p4032_p5 = scmp.lt.u32.totalorder %s4025_s22, %s5130_s0 }
  0x62   : > { %p4028_p0 = pnand %p4026_p13, %p4382_p8 }
  0x64   : > { %p4029_p2 = pneg %p4028_p0 }
  0x66   : > { %p4034_p7 = pnand %p4032_p5, %p4029_p2 }
  0x68   : > { %4037 = shalt.err (!%p4034_p7)
}
  0x69   : > { %s4038_s16 = scalar_lea.vmem %s246_s15, 48  ;;  %s4045_s26 = scalar_lea.vmem %s246_s15, 64 }
  0x6a   : > { %p4039_p9 = scmp.ne.s32.totalorder %s246_s15, %s4038_s16  ;;  %p4046_p12 = scmp.lt.s32.totalorder %s246_s15, %s246_s15 }
  0x6b   : > { %p4047_p4 = scmp.lt.s32.totalorder %s4045_s26, %s4038_s16 }
  0x6c   : > { %p4041_p10 = pnand %p4039_p9, %p4382_p8 }
  0x6d   : > { %p4048_p1 = por %p4047_p4, %p4046_p12 }
  0x6e   : > { %p4042_p11 = pneg %p4041_p10 }
  0x70   : > { %p4049_p3 = pnand %p4048_p1, %p4042_p11 }
  0x72   : > { %4052 = shalt.err (!%p4049_p3)
}
  0x73   : > { %3813 = dma.hbm_to_vmem [thread:$0]  (!%p4368_p6), %s5130_s0, 48, %s246_s15, [#allocation5]  }
  0x74   : > { %s4053_s18 = scalar_lea.hbm %s5132_s2, 48 }
  0x75   : > { %p4054_p13 = scmp.ne.s32.totalorder %s5132_s2, %s4053_s18  ;;  %p4060_p3 = scmp.lt.u32.totalorder %s4053_s18, %s5132_s2 }
  0x77   : > { %p4056_p0 = pnand %p4054_p13, %p4382_p8 }
  0x79   : > { %p4057_p1 = pneg %p4056_p0 }
  0x7b   : > { %p4062_p2 = pnand %p4060_p3, %p4057_p1 }
  0x7d   : > { %4065 = shalt.err (!%p4062_p2)
}
  0x7e   : > { %s4066_s14 = scalar_lea.vmem %s268_s19, 48  ;;  %s4073_s15 = scalar_lea.vmem %s268_s19, 64 }
  0x7f   : > { %p4067_p5 = scmp.ne.s32.totalorder %s268_s19, %s4066_s14  ;;  %p4074_p10 = scmp.lt.s32.totalorder %s268_s19, %s268_s19 }
  0x80   : > { %p4075_p11 = scmp.lt.s32.totalorder %s4073_s15, %s4066_s14 }
  0x81   : > { %p4069_p7 = pnand %p4067_p5, %p4382_p8 }
  0x82   : > { %p4076_p12 = por %p4075_p11, %p4074_p10 }
  0x83   : > { %p4070_p9 = pneg %p4069_p7 }
  0x85   : > { %p4077_p4 = pnand %p4076_p12, %p4070_p9 }
  0x87   : > { %4080 = shalt.err (!%p4077_p4)
}
  0x88   : > { %3819 = dma.hbm_to_vmem [thread:$0]  (!%p4368_p6), %s5132_s2, 48, %s268_s19, [#allocation8]  }
  0x89   : > { %s4262_s9 = smov [#allocation12]   ;;  %s4263_s1 = smov [#allocation16]  }
  0x8a   : > { %s289_s13 = sshll.u32 %s4262_s9, 4  ;;  %s312_s3 = sshll.u32 %s4263_s1, 4  ;;  %s290_s13 = int_to_ptr.vmem [resolvable:$true] %s289_s13  ;;  %s313_s3 = int_to_ptr.vmem [resolvable:$true] %s312_s3 }
  0x8b   : > { %s4081_s21 = scalar_lea.hbm %s5134_s4, 48 }
  0x8c   : > { %p4082_p13 = scmp.ne.s32.totalorder %s5134_s4, %s4081_s21  ;;  %p4088_p3 = scmp.lt.u32.totalorder %s4081_s21, %s5134_s4 }
  0x8e   : > { %p4084_p0 = pnand %p4082_p13, %p4382_p8 }
  0x90   : > { %p4085_p1 = pneg %p4084_p0 }
  0x92   : > { %p4090_p2 = pnand %p4088_p3, %p4085_p1 }
  0x94   : > { %4093 = shalt.err (!%p4090_p2)
}
  0x95   : > { %s4094_s19 = scalar_lea.vmem %s290_s13, 48  ;;  %s4101_s16 = scalar_lea.vmem %s290_s13, 64 }
  0x96   : > { %p4095_p5 = scmp.ne.s32.totalorder %s290_s13, %s4094_s19  ;;  %p4102_p10 = scmp.lt.s32.totalorder %s290_s13, %s290_s13 }
  0x97   : > { %p4103_p11 = scmp.lt.s32.totalorder %s4101_s16, %s4094_s19 }
  0x98   : > { %p4097_p7 = pnand %p4095_p5, %p4382_p8 }
  0x99   : > { %p4104_p12 = por %p4103_p11, %p4102_p10 }
  0x9a   : > { %p4098_p9 = pneg %p4097_p7 }
  0x9c   : > { %p4105_p4 = pnand %p4104_p12, %p4098_p9 }
  0x9e   : > { %4108 = shalt.err (!%p4105_p4)
}
  0x9f   : > { %3825 = dma.hbm_to_vmem [thread:$0]  (!%p4368_p6), %s5134_s4, 48, %s290_s13, [#allocation11]  }
  0xa0   : > { %s4109_s20 = scalar_lea.hbm %s5137_s7, 288 }
  0xa1   : > { %p4110_p13 = scmp.ne.s32.totalorder %s5137_s7, %s4109_s20  ;;  %p4116_p3 = scmp.lt.u32.totalorder %s4109_s20, %s5137_s7 }
  0xa3   : > { %p4112_p0 = pnand %p4110_p13, %p4382_p8 }
  0xa5   : > { %p4113_p1 = pneg %p4112_p0 }
  0xa7   : > { %p4118_p2 = pnand %p4116_p3, %p4113_p1 }
  0xa9   : > { %4121 = shalt.err (!%p4118_p2)
}
  0xaa   : > { %s4122_s15 = scalar_lea.vmem %s313_s3, 288  ;;  %p4130_p10 = scmp.lt.s32.totalorder %s313_s3, %s313_s3 }
  0xab   : > { %p4123_p5 = scmp.ne.s32.totalorder %s313_s3, %s4122_s15  ;;  %p4131_p11 = scmp.lt.s32.totalorder %s4122_s15, %s4122_s15 }
  0xad   : > { %p4125_p7 = pnand %p4123_p5, %p4382_p8  ;;  %p4132_p12 = por %p4131_p11, %p4130_p10 }
  0xaf   : > { %p4126_p9 = pneg %p4125_p7 }
  0xb1   : > { %p4133_p4 = pnand %p4132_p12, %p4126_p9 }
  0xb3   : > { %4136 = shalt.err (!%p4133_p4)
}
  0xb4   : > { %3831 = dma.hbm_to_vmem [thread:$0]  (!%p4368_p6), %s5137_s7, 288, %s313_s3, [#allocation17], %s4258_s25, %s4258_s25, %s4259_s10  }
  0xb5   : > { %s3552_s17 = sadd.s32 4294967294, %s4253_s30   ;;  %s4531_s23 = sadd.s32 1, %s4253_s30  }
  0xb6   : > { %s140_s16 = sadd.s32 1, %s4249_s29  ;;  %s137_s26 = ssub.s32 %s4253_s30, %s4531_s23 }
  0xb7   : > { %p147_p8 = scmp.ne.s32.totalorder %s4249_s29, %s4245_s28  ;;  %p138_p13 = scmp.eq.s32.totalorder %s137_s26, 0 }
  0xb8   : > { %p148_p0 = scmp.eq.s32.totalorder %s4253_s30, 0  ;;  %p153_p1 = scmp.ne.s32.totalorder %s4245_s28, %s4241_s27 }
  0xb9   : > { %p219_p3 = scmp.eq.s32.totalorder %s4350_s11, 1  ;;  %p5150_p5 = scmp.eq.s32.totalorder %s4350_s11, 0 }
  0xba   : > { %s4543_s9 = scalar_select %p138_p13, %s4249_s29, %s140_s16  }
  0xbb   : > { %p149_p2 = por %p148_p0, %p147_p8  ;;  %p4547_p7 = por %p5150_p5, %p153_p1 }
  0xbc   : > { %p4551_p6 = por %p219_p3, %p147_p8  ;;  %p225_p9 = scmp.eq.s32.totalorder %s3552_s17, 1 }
  0xbd   : > { %p3847_p10 = scmp.lt.s32.totalorder %s4253_s30, 2  ;;  %s326_s1 = sand.u32 1, %s4253_s30  }
  0xbe   : > { %s5152_s10 = scalar_select %p4551_p6, 1, 0 }
  0xbf   : > { %p4556_p11 = por %p225_p9, %p153_p1  ;;  %s328_s18 = sand.u32 1, %s4249_s29  }
  0xc0   : > { %s3775_s20 = smul.u32 192, %s4253_s30  ;;  %p4563_p12 = pnand %p3847_p10, %p149_p2 }
  0xc1   : > { %s5153_s3 = scalar_select %p4556_p11, 1, 0 }
  0xc2   : > { %s3774_s21 = smul.u32 12, %s328_s18  ;;  %s4570_s15 = scalar_lea.hbm %s5135_s5, %s3775_s20 }
  0xc3   : > { %s327_s17 = scalar_lea.sflag [#allocation14], %s326_s1  ;;  %s4137_s16 = scalar_lea.hbm %s4570_s15, 192 }
  0xc4   : > { %s330_s13 = scalar_lea.vmem [#allocation13], %s3774_s21  ;;  %p4138_p4 = scmp.ne.s32.totalorder %s4570_s15, %s4137_s16 }
  0xc5   : > { %s338_s19 = sshll.u32 %s330_s13, 4  ;;  %p4139_p8 = pneg %p4563_p12  ;;  %s4572_s19 = int_to_ptr.vmem [resolvable:$true] %s338_s19 }
  0xc6   : > { %s4142_s20 = scalar_lea.hbm %s5135_s5, 384  ;;  %p4143_p1 = scmp.lt.u32.totalorder %s4570_s15, %s5135_s5 }
  0xc7   : > { %p4140_p13 = pnand %p4139_p8, %p4138_p4  ;;  %p4144_p3 = scmp.lt.u32.totalorder %s4142_s20, %s4137_s16 }
  0xc8   : > { %p4146_p5 = scmp.lt.u32.totalorder %s4137_s16, %s4570_s15 }
  0xc9   : > { %p4141_p0 = pneg %p4140_p13  ;;  %p4145_p2 = por %p4144_p3, %p4143_p1 }
  0xcb   : > { %p4147_p9 = por %p4146_p5, %p4145_p2 }
  0xcd   : > { %p4148_p10 = pnand %p4147_p9, %p4141_p0 }
  0xcf   : > { %4151 = shalt.err (!%p4148_p10)
}
  0xd0   : > { %s4152_s1 = scalar_lea.vmem %s4572_s19, 192  ;;  %s4264_s21 = smov [#allocation13]  }
  0xd1   : > { %p4153_p4 = scmp.ne.s32.totalorder %s4572_s19, %s4152_s1  ;;  %s4157_s13 = sshll.u32 %s4264_s21, 4  ;;  %s4158_s13 = int_to_ptr.vmem [resolvable:$false] %s4157_s13 }
  0xd2   : > { %s4159_s26 = scalar_lea.vmem %s4158_s13, 384  ;;  %p4160_p6 = scmp.lt.s32.totalorder %s4572_s19, %s4158_s13 }
  0xd3   : > { %p4155_p13 = pnand %p4153_p4, %p4139_p8  ;;  %p4161_p1 = scmp.lt.s32.totalorder %s4159_s26, %s4152_s1 }
  0xd5   : > { %p4156_p11 = pneg %p4155_p13  ;;  %p4162_p3 = por %p4161_p1, %p4160_p6 }
  0xd7   : > { %p4163_p2 = pnand %p4162_p3, %p4156_p11 }
  0xd9   : > { %4166 = shalt.err (!%p4163_p2)
}
  0xda   : > { %3835 = dma.hbm_to_vmem [thread:$0]  (!%p4563_p12), %s4570_s15, 192, %s4572_s19, %s327_s17  }
  0xdb   : > { %p5155_p0 = scmp.ne.s32.totalorder %s5145_s12, 0 }
  0xdc   : > { %p5156_p8 = scmp.eq.s32.totalorder (!%p5155_p0), %s4350_s11, 0 }
  0xdd   : > { %347 = sbr.rel (%p5155_p0) target bundleno = 2784 (0xae0), region = 52 }
  0xe4   : > { %4212 = dma.done.wait (%p5156_p8), [#allocation5], 48   ;;  %p5157_p5 = pmov %p5156_p8 }
  0xe6   : > { %4214 = vsyncadd (%p5157_p5), [#allocation5], 4294967248  ;;  %p5158_p9 = pmov %p5157_p5 }
  0xe7   : > { %p5159_p6 = pmov %p5157_p5 }
  0xe8   : > { %4216 = dma.done.wait (%p5158_p9), [#allocation8], 96  }
  0xe9   : > { %4218 = vsyncadd (%p5159_p6), [#allocation8], 4294967200  ;;  %p5160_p11 = pmov %p5157_p5 }
  0xea   : > { %p5161_p12 = pmov %p5157_p5 }
  0xeb   : > { %4220 = dma.done.wait (%p5160_p11), [#allocation11], 96  }
  0xec   : > { %4222 = vsyncadd (%p5161_p12), [#allocation11], 4294967200  ;;  %s369_s12 = sand.u32 1, %s4350_s11   ;;  %s371_s22 = sand.u32 1, %s4245_s28  }
  0xed   : > { %s4617_s15 = smul.u32 12, %s371_s22  ;;  %s370_s19 = scalar_lea.sflag [#allocation14], %s369_s12 }
  0xef   : > { %s4620_s17 = scalar_lea.vmem [#allocation13], %s4617_s15 }
  0xf0   : > { %4224 = dma.done.wait (%p4547_p7), %s370_s19, 192  }
  0xf1   : > { %4226 = vsyncadd (%p4547_p7), %s370_s19, 4294967104  ;;  %p5162_p10 = pmov %p5157_p5 }
  0xf2   : > { %p5163_p4 = pmov %p5157_p5 }
  0xf3   : > { %4228 = dma.done.wait (%p5162_p10), [#allocation14], 288  }
  0xf4   : > { %4230 = vsyncadd (%p5163_p4), [#allocation14], 4294967008  ;;  %p5164_p13 = pmov %p5163_p4 }
  0xf5   : > { %p5165_p1 = pmov %p5163_p4 }
  0xf6   : > { %4232 = dma.done.wait (%p5164_p13), [#allocation17], 288  }
  0xf7   : > { %4234 = vsyncadd (%p5165_p1), [#allocation17], 4294967008  ;;  %v432_v0 = vlaneseq  ;;  %v4265_v1 = vmov 1983009808   ;;  %v4266_v4 = vmov 0   ;;  %v4267_v6 = vmov 0.0  }
  0xf8   : > { %v430_v2 = vunpack.c.l.s4 %v4265_v1  ;;  %511 = vmatprep.mubr.bf16.mxu0 %v4266_v4  ;;  %416 = vst [vmem:[#allocation2] sm:$0x3] %v4266_v4  ;;  %3666 = vmatprep.subr.bf16.mxu1 %v4267_v6  ;;  %v417_v8 = vld [vmem:[%s4620_s17] sm:$0xff]  ;;  %v418_v9 = vld [vmem:[%s4620_s17 + $0x8] sm:$0xf]  ;;  %vm4268_vm0 = vmmov 0  }
  0xf9   : > { %v4634_v3 = vshrl.u32 %v432_v0, 7  ;;  %3668 = vmatprep.mubr.msk.bf16.mxu1 %vm4268_vm0, %v4267_v6  ;;  %v420_v10 = vcombine.high %v417_v8, %v417_v8  ;;  %v424_v11 = vpack.c.bf16 %v418_v9, %v418_v9  ;;  %s4269_s25 = smov 127   ;;  %s4270_s16 = smov 126   ;;  %vm469_vm1 = vcmask 1041408   ;;  %v446_v39 = vld [vmem:[#allocation15] sm:$0x3] }
  0xfa   : > { %v431_v5 = vunpack.c.0.s8 %v430_v2  ;;  %s4271_s18 = smov 110   ;;  %vm465_vm2 = vcmask 31744   ;;  %s4272_s20 = smov 109   ;;  %vm593_vm3 = vcmask 1039360   ;;  %vm725_vm4 = vcmask 1031168  }
  0xfb   : > { %v3571_v12 = vpack.c.bf16 %v420_v10, %v417_v8  ;;  %s4273_s24 = smov 108   ;;  %s4274_s14 = smov 92   ;;  %v568_v8 = vld [vmem:[#allocation15 + $0x2] sm:$0x3]  ;;  %vm857_vm5 = vcmask 900096   ;;  %vm989_vm6 = vcmask 891904  }
  0xfc   : > { %v4640_v7 = vsub.s32 %v431_v5, %v4634_v3  ;;  %s4275_s1 = smov 91   ;;  %s4276_s21 = smov 90   ;;  %vm1121_vm7 = vcmask 883712   ;;  %vm1253_vm8 = vcmask 752640   ;;  %vm1385_vm9 = vcmask 744448  }
  0xfd   : > { %vm1517_vm10 = vcmask 736256   ;;  %vm565_vm11 = vcmask 551936   ;;  %vm5142_vm12 = vcmask 1043456   ;;  %vm1722_vm13 = vcmask 1043458   ;;  %s4278_s13 = smov 3   ;;  %s4279_s26 = smov 1  }
  0xfe   : > { %v442_v13 = vrot.slane %v424_v11, %v4640_v7  ;;  %v435_v14 = vrot.slane %v3571_v12, %v4640_v7  ;;  %vm1723_vm14 = vmor %vm1722_vm13, %vm469_vm1  ;;  %vm1724_vm15 = vcmask 553988   ;;  %vm1933_vm13 = vcmask 23552   ;;  %s4280_s12 = smov 54   ;;  %s4281_s19 = smov 18  }
  0xff   : > { %p5173_p3 = scmp.ne.s32.totalorder %s5152_s10, 0 }
 0x100   : > { %v443_v15 = vcombine.low %v435_v14, %v442_v13 }
 0x102   : > { %445 = vst [vmem:[#allocation2 + $0x2] sm:$0x3f] %v443_v15 }
 0x109   : > { %v569_v16 = vld [vmem:[#allocation2 + $0x2] sm:$0x3f] }
 0x10a   : > { %v701_v17 = vld [vmem:[#allocation2 + $0x2] sm:$0x3f]  ;;  %v578_v18 = vrot.slane %v569_v16, %v4640_v7  ;;  %v571_v19 = vcombine.high %v569_v16, %v569_v16 }
 0x10b   : > { %v710_v22 = vrot.slane %v701_v17, %v4640_v7  ;;  %v703_v23 = vcombine.high %v701_v17, %v701_v17  ;;  %v447_v24 = vld [vmem:[#allocation2 + $0x2] sm:$0x3f] }
 0x10c   : > { %587 = vrot.lane.b32.xlu0 %v578_v18, %s4269_s25  ;;  %v586_v20 = vcombine.high %v578_v18, %v578_v18  ;;  %v585_v21 = vrot.slane %v571_v19, %v4640_v7  ;;  %v833_v26 = vld [vmem:[#allocation2 + $0x2] sm:$0x3f]  ;;  %v456_v28 = vrot.slane %v447_v24, %v4640_v7  ;;  %v449_v29 = vcombine.high %v447_v24, %v447_v24 }
 0x10d   : > { %v718_v25 = vcombine.high %v710_v22, %v710_v22  ;;  %v717_v27 = vrot.slane %v703_v23, %v4640_v7  ;;  %v842_v30 = vrot.slane %v833_v26, %v4640_v7  ;;  %v835_v31 = vcombine.high %v833_v26, %v833_v26  ;;  %v965_v37 = vld [vmem:[#allocation2 + $0x2] sm:$0x3f] }
 0x10e   : > { %591 = vrot.lane.b32.xlu1 %v585_v21, %s4269_s25  ;;  %v464_v32 = vcombine.high %v456_v28, %v456_v28  ;;  %v471_v33 = vsel %vm469_vm1, %v456_v28, 0  ;;  %v463_v34 = vrot.slane %v449_v29, %v4640_v7  ;;  %v974_v40 = vrot.slane %v965_v37, %v4640_v7  ;;  %v1097_v43 = vld [vmem:[#allocation2 + $0x2] sm:$0x3f] }
 0x10f   : > { %v850_v35 = vcombine.high %v842_v30, %v842_v30  ;;  %v849_v38 = vrot.slane %v835_v31, %v4640_v7  ;;  %v967_v41 = vcombine.high %v965_v37, %v965_v37  ;;  %v1106_v45 = vrot.slane %v1097_v43, %v4640_v7  ;;  %v1229_v48 = vld [vmem:[#allocation2 + $0x2] sm:$0x3f]  ;;  %v964_v37 = vld [vmem:[#allocation15 + $0x8] sm:$0x3] }
 0x110   : > { %589 = vrot.lane.b32.xlu0 %v586_v20, %s4269_s25  ;;  %3572 = vmatprep.subr.msk.bf16.mxu0 %vm469_vm1, %v464_v32  ;;  %v477_v36 = vsel %vm469_vm1, %v463_v34, 0  ;;  %v982_v42 = vcombine.high %v974_v40, %v974_v40  ;;  %v1099_v46 = vcombine.high %v1097_v43, %v1097_v43  ;;  %v1238_v50 = vrot.slane %v1229_v48, %v4640_v7  ;;  %v1361_v53 = vld [vmem:[#allocation2 + $0x2] sm:$0x3f] }
 0x111   : > { %480 = vmatpush1.bf16.msra.mxu0 %v471_v33  ;;  %3667 = vmatpush3.bf16.msra.mxu1 %v477_v36  ;;  %v981_v44 = vrot.slane %v967_v41, %v4640_v7  ;;  %v1114_v47 = vcombine.high %v1106_v45, %v1106_v45  ;;  %v1231_v51 = vcombine.high %v1229_v48, %v1229_v48  ;;  %v1493_v58 = vld [vmem:[#allocation2 + $0x2] sm:$0x3f] }
 0x112   : > { %719 = vrot.lane.b32.xlu1 %v710_v22, %s4270_s16  ;;  %3672 = vmatprep.subr.bf16.mxu1 %v4267_v6  ;;  %v1113_v49 = vrot.slane %v1099_v46, %v4640_v7  ;;  %v1246_v52 = vcombine.high %v1238_v50, %v1238_v50  ;;  %v1370_v55 = vrot.slane %v1361_v53, %v4640_v7  ;;  %v700_v20 = vld [vmem:[#allocation15 + $0x4] sm:$0x3]  ;;  %v832_v28 = vld [vmem:[#allocation15 + $0x6] sm:$0x3] }
 0x113   : > { %v1245_v54 = vrot.slane %v1231_v51, %v4640_v7  ;;  %v1363_v56 = vcombine.high %v1361_v53, %v1361_v53  ;;  %v1502_v60 = vrot.slane %v1493_v58, %v4640_v7  ;;  %v1495_v61 = vcombine.high %v1493_v58, %v1493_v58  ;;  %v1228_v58 = vld [vmem:[#allocation15 + $0xc] sm:$0x3] }
 0x114   : > { %721 = vrot.lane.b32.xlu0 %v718_v25, %s4270_s16  ;;  %3573 = vmatmul.mubr.msk.bf16.vlgmr.msra.gmra.mrb[0].mxu0 %vm465_vm2, %v446_v39  ;;  %v1378_v57 = vcombine.high %v1370_v55, %v1370_v55 }
 0x115   : > { %3669 = vmatmul.mubr.msk.bf16.vlgmr.msra.gmra.mrb[0].mxu1 %vm465_vm2, %v446_v39  ;;  %640 = vmatprep.mubr.bf16.mxu0 %v4266_v4  ;;  %v1377_v59 = vrot.slane %v1363_v56, %v4640_v7  ;;  %v1510_v62 = vcombine.high %v1502_v60, %v1502_v60  ;;  %v1509_v63 = vrot.slane %v1495_v61, %v4640_v7 }
 0x116   : > { %723 = vrot.lane.b32.xlu1 %v717_v27, %s4270_s16  ;;  %3674 = vmatprep.mubr.msk.bf16.mxu1 %vm4268_vm0, %v4267_v6 }
 0x118   : > { %851 = vrot.lane.b32.xlu0 %v842_v30, %s4271_s18 }
 0x11a   : > { %853 = vrot.lane.b32.xlu1 %v850_v35, %s4271_s18 }
 0x11c   : > { %855 = vrot.lane.b32.xlu0 %v849_v38, %s4271_s18 }
 0x11e   : > { %983 = vrot.lane.b32.xlu1 %v974_v40, %s4272_s20 }
 0x120   : > { %985 = vrot.lane.b32.xlu0 %v982_v42, %s4272_s20 }
 0x122   : > { %987 = vrot.lane.b32.xlu1 %v981_v44, %s4272_s20 }
 0x124   : > { %1115 = vrot.lane.b32.xlu0 %v1106_v45, %s4273_s24 }
 0x126   : > { %1117 = vrot.lane.b32.xlu1 %v1114_v47, %s4273_s24 }
 0x128   : > { %1119 = vrot.lane.b32.xlu0 %v1113_v49, %s4273_s24 }
 0x12a   : > { %1247 = vrot.lane.b32.xlu1 %v1238_v50, %s4274_s14  ;;  %v1096_v50 = vld [vmem:[#allocation15 + $0xa] sm:$0x3] }
 0x12c   : > { %1249 = vrot.lane.b32.xlu0 %v1246_v52, %s4274_s14 }
 0x12e   : > { %1251 = vrot.lane.b32.xlu1 %v1245_v54, %s4274_s14 }
 0x130   : > { %1379 = vrot.lane.b32.xlu0 %v1370_v55, %s4275_s1 }
 0x132   : > { %1381 = vrot.lane.b32.xlu1 %v1378_v57, %s4275_s1 }
 0x134   : > { %1383 = vrot.lane.b32.xlu0 %v1377_v59, %s4275_s1 }
 0x136   : > { %1511 = vrot.lane.b32.xlu1 %v1502_v60, %s4276_s21 }
 0x138   : > { %1513 = vrot.lane.b32.xlu0 %v1510_v62, %s4276_s21 }
 0x13a   : > { %1515 = vrot.lane.b32.xlu1 %v1509_v63, %s4276_s21 }
 0x17e   : > { %v588_v0 = vpop.permute.xlu0 %587 }
 0x180   : > { %v592_v1 = vpop.permute.xlu1 %591 }
 0x181   : > { %v606_v2 = vsel %vm469_vm1, %v592_v1, 0 }
 0x182   : > { %v590_v5 = vpop.permute.xlu0 %589  ;;  %3673 = vmatpush3.bf16.msra.mxu1 %v606_v2 }
 0x183   : > { %v594_v9 = vsel %vm593_vm3, %v588_v0, %v590_v5  ;;  %v595_v10 = vsel %vm593_vm3, %v590_v5, %v592_v1  ;;  %3678 = vmatprep.subr.bf16.mxu1 %v4267_v6  ;;  %v1360_v1 = vld [vmem:[#allocation15 + $0xe] sm:$0x3]  ;;  %v1492_v5 = vld [vmem:[#allocation15 + $0x10] sm:$0x3] }
 0x184   : > { %v600_v11 = vsel %vm469_vm1, %v594_v9, 0  ;;  %v720_v12 = vpop.permute.xlu1 %719  ;;  %3575 = vmatprep.subr.msk.bf16.mxu0 %vm469_vm1, %v595_v10 }
 0x185   : > { %609 = vmatpush1.bf16.msra.mxu0 %v600_v11  ;;  %3675 = vmatmul.mubr.msk.bf16.vlgmr.msra.gmra.mrb[4].mxu1 %vm465_vm2, %v568_v8 }
 0x186   : > { %v722_v13 = vpop.permute.xlu0 %721  ;;  %3680 = vmatprep.mubr.msk.bf16.mxu1 %vm4268_vm0, %v4267_v6 }
 0x187   : > { %v726_v14 = vsel %vm725_vm4, %v720_v12, %v722_v13 }
 0x188   : > { %v724_v15 = vpop.permute.xlu1 %723  ;;  %3576 = vmatmul.mubr.msk.bf16.vlgmr.msra.gmra.mrb[4].mxu0 %vm465_vm2, %v568_v8  ;;  %v732_v18 = vsel %vm469_vm1, %v726_v14, 0 }
 0x189   : > { %v727_v16 = vsel %vm725_vm4, %v722_v13, %v724_v15  ;;  %v738_v17 = vsel %vm469_vm1, %v724_v15, 0  ;;  %772 = vmatprep.mubr.bf16.mxu0 %v4266_v4 }
 0x18a   : > { %3578 = vmatprep.subr.msk.bf16.mxu0 %vm469_vm1, %v727_v16  ;;  %v852_v19 = vpop.permute.xlu0 %851  ;;  %3679 = vmatpush3.bf16.msra.mxu1 %v738_v17 }
 0x18b   : > { %741 = vmatpush1.bf16.msra.mxu0 %v732_v18  ;;  %3684 = vmatprep.subr.bf16.mxu1 %v4267_v6 }
 0x18c   : > { %v854_v21 = vpop.permute.xlu1 %853 }
 0x18d   : > { %v858_v22 = vsel %vm857_vm5, %v852_v19, %v854_v21  ;;  %3681 = vmatmul.mubr.msk.bf16.vlgmr.msra.gmra.mrb[8].mxu1 %vm465_vm2, %v700_v20 }
 0x18e   : > { %v856_v23 = vpop.permute.xlu0 %855  ;;  %v864_v24 = vsel %vm469_vm1, %v858_v22, 0  ;;  %3686 = vmatprep.mubr.msk.bf16.mxu1 %vm4268_vm0, %v4267_v6 }
 0x18f   : > { %v870_v25 = vsel %vm469_vm1, %v856_v23, 0  ;;  %v859_v26 = vsel %vm857_vm5, %v854_v21, %v856_v23 }
 0x190   : > { %3579 = vmatmul.mubr.msk.bf16.vlgmr.msra.gmra.mrb[8].mxu0 %vm465_vm2, %v700_v20  ;;  %3581 = vmatprep.subr.msk.bf16.mxu0 %vm469_vm1, %v859_v26  ;;  %v984_v27 = vpop.permute.xlu1 %983 }
 0x191   : > { %873 = vmatpush1.bf16.msra.mxu0 %v864_v24  ;;  %904 = vmatprep.mubr.bf16.mxu0 %v4266_v4 }
 0x192   : > { %3685 = vmatpush3.bf16.msra.mxu1 %v870_v25  ;;  %v986_v29 = vpop.permute.xlu0 %985 }
 0x193   : > { %v990_v30 = vsel %vm989_vm6, %v984_v27, %v986_v29  ;;  %3690 = vmatprep.subr.bf16.mxu1 %v4267_v6 }
 0x194   : > { %v988_v31 = vpop.permute.xlu1 %987  ;;  %v996_v34 = vsel %vm469_vm1, %v990_v30, 0 }
 0x195   : > { %v991_v32 = vsel %vm989_vm6, %v986_v29, %v988_v31  ;;  %v1002_v33 = vsel %vm469_vm1, %v988_v31, 0  ;;  %3687 = vmatmul.mubr.msk.bf16.vlgmr.msra.gmra.mrb[12].mxu1 %vm465_vm2, %v832_v28 }
 0x196   : > { %3584 = vmatprep.subr.msk.bf16.mxu0 %vm469_vm1, %v991_v32  ;;  %v1116_v35 = vpop.permute.xlu0 %1115  ;;  %3691 = vmatpush3.bf16.msra.mxu1 %v1002_v33 }
 0x197   : > { %3692 = vmatprep.mubr.msk.bf16.mxu1 %vm4268_vm0, %v4267_v6  ;;  %3696 = vmatprep.subr.bf16.mxu1 %v4267_v6 }
 0x198   : > { %3582 = vmatmul.mubr.msk.bf16.vlgmr.msra.gmra.mrb[12].mxu0 %vm465_vm2, %v832_v28  ;;  %v1118_v36 = vpop.permute.xlu1 %1117 }
 0x199   : > { %1005 = vmatpush1.bf16.msra.mxu0 %v996_v34  ;;  %1036 = vmatprep.mubr.bf16.mxu0 %v4266_v4  ;;  %v1122_v40 = vsel %vm1121_vm7, %v1116_v35, %v1118_v36 }
 0x19a   : > { %v1120_v38 = vpop.permute.xlu0 %1119  ;;  %v1128_v43 = vsel %vm469_vm1, %v1122_v40, 0 }
 0x19b   : > { %v1134_v39 = vsel %vm469_vm1, %v1120_v38, 0  ;;  %v1123_v41 = vsel %vm1121_vm7, %v1118_v36, %v1120_v38 }
 0x19c   : > { %3587 = vmatprep.subr.msk.bf16.mxu0 %vm469_vm1, %v1123_v41  ;;  %v1248_v42 = vpop.permute.xlu1 %1247 }
 0x19d   : > { %3693 = vmatmul.mubr.msk.bf16.vlgmr.msra.gmra.mrb[16].mxu1 %vm465_vm2, %v964_v37 }
 0x19e   : > { %3697 = vmatpush3.bf16.msra.mxu1 %v1134_v39  ;;  %v1250_v44 = vpop.permute.xlu0 %1249  ;;  %3698 = vmatprep.mubr.msk.bf16.mxu1 %vm4268_vm0, %v4267_v6 }
 0x19f   : > { %3702 = vmatprep.subr.bf16.mxu1 %v4267_v6  ;;  %v1254_v48 = vsel %vm1253_vm8, %v1248_v42, %v1250_v44 }
 0x1a0   : > { %3585 = vmatmul.mubr.msk.bf16.vlgmr.msra.gmra.mrb[16].mxu0 %vm465_vm2, %v964_v37  ;;  %v1252_v45 = vpop.permute.xlu1 %1251  ;;  %v1260_v52 = vsel %vm469_vm1, %v1254_v48, 0 }
 0x1a1   : > { %1137 = vmatpush1.bf16.msra.mxu0 %v1128_v43  ;;  %1168 = vmatprep.mubr.bf16.mxu0 %v4266_v4  ;;  %v1255_v46 = vsel %vm1253_vm8, %v1250_v44, %v1252_v45  ;;  %v1266_v49 = vsel %vm469_vm1, %v1252_v45, 0 }
 0x1a2   : > { %3590 = vmatprep.subr.msk.bf16.mxu0 %vm469_vm1, %v1255_v46  ;;  %v1380_v47 = vpop.permute.xlu0 %1379 }
 0x1a4   : > { %v1382_v51 = vpop.permute.xlu1 %1381 }
 0x1a5   : > { %3699 = vmatmul.mubr.msk.bf16.vlgmr.msra.gmra.mrb[20].mxu1 %vm465_vm2, %v1096_v50  ;;  %v1386_v57 = vsel %vm1385_vm9, %v1380_v47, %v1382_v51 }
 0x1a6   : > { %3703 = vmatpush3.bf16.msra.mxu1 %v1266_v49  ;;  %v1384_v53 = vpop.permute.xlu0 %1383  ;;  %3704 = vmatprep.mubr.msk.bf16.mxu1 %vm4268_vm0, %v4267_v6  ;;  %v1392_v61 = vsel %vm469_vm1, %v1386_v57, 0 }
 0x1a7   : > { %v1387_v54 = vsel %vm1385_vm9, %v1382_v51, %v1384_v53  ;;  %3708 = vmatprep.subr.bf16.mxu1 %v4267_v6  ;;  %v1398_v56 = vsel %vm469_vm1, %v1384_v53, 0 }
 0x1a8   : > { %3588 = vmatmul.mubr.msk.bf16.vlgmr.msra.gmra.mrb[20].mxu0 %vm465_vm2, %v1096_v50  ;;  %v1512_v55 = vpop.permute.xlu1 %1511 }
 0x1a9   : > { %1269 = vmatpush1.bf16.msra.mxu0 %v1260_v52  ;;  %1300 = vmatprep.mubr.bf16.mxu0 %v4266_v4 }
 0x1aa   : > { %3593 = vmatprep.subr.msk.bf16.mxu0 %vm469_vm1, %v1387_v54  ;;  %v1514_v59 = vpop.permute.xlu0 %1513 }
 0x1ab   : > { %v1518_v63 = vsel %vm1517_vm10, %v1512_v55, %v1514_v59 }
 0x1ac   : > { %v1516_v60 = vpop.permute.xlu1 %1515  ;;  %v1524_v2 = vsel %vm469_vm1, %v1518_v63, 0 }
 0x1ad   : > { %3705 = vmatmul.mubr.msk.bf16.vlgmr.msra.gmra.mrb[24].mxu1 %vm465_vm2, %v1228_v58  ;;  %v1519_v62 = vsel %vm1517_vm10, %v1514_v59, %v1516_v60  ;;  %v1530_v0 = vsel %vm469_vm1, %v1516_v60, 0 }
 0x1ae   : > { %3709 = vmatpush3.bf16.msra.mxu1 %v1398_v56  ;;  %3710 = vmatprep.mubr.msk.bf16.mxu1 %vm4268_vm0, %v4267_v6 }
 0x1af   : > { %3714 = vmatprep.subr.bf16.mxu1 %v4267_v6 }
 0x1b0   : > { %3591 = vmatmul.mubr.msk.bf16.vlgmr.msra.gmra.mrb[24].mxu0 %vm465_vm2, %v1228_v58 }
 0x1b1   : > { %1401 = vmatpush1.bf16.msra.mxu0 %v1392_v61  ;;  %1432 = vmatprep.mubr.bf16.mxu0 %v4266_v4 }
 0x1b2   : > { %3596 = vmatprep.subr.msk.bf16.mxu0 %vm469_vm1, %v1519_v62 }
 0x1b5   : > { %3711 = vmatmul.mubr.msk.bf16.vlgmr.msra.gmra.mrb[28].mxu1 %vm465_vm2, %v1360_v1 }
 0x1b6   : > { %3715 = vmatpush3.bf16.msra.mxu1 %v1530_v0  ;;  %3716 = vmatprep.mubr.msk.bf16.mxu1 %vm4268_vm0, %v4267_v6 }
 0x1b7   : > { %3720 = vmatprep.subr.bf16.mxu1 %v4267_v6 }
 0x1b8   : > { %3594 = vmatmul.mubr.msk.bf16.vlgmr.msra.gmra.mrb[28].mxu0 %vm465_vm2, %v1360_v1 }
 0x1b9   : > { %1533 = vmatpush1.bf16.msra.mxu0 %v1524_v2  ;;  %1564 = vmatprep.mubr.bf16.mxu0 %v4266_v4 }
 0x1bd   : > { %3717 = vmatmul.mubr.msk.bf16.vlgmr.msra.gmra.mrb[32].mxu1 %vm465_vm2, %v1492_v5 }
 0x1be   : > { %3722 = vmatprep.mubr.msk.bf16.mxu1 %vm4268_vm0, %v4267_v6 }
 0x1c0   : > { %3597 = vmatmul.mubr.msk.bf16.vlgmr.msra.gmra.mrb[32].mxu0 %vm465_vm2, %v1492_v5 }
 0x1c1   : > { %2208 = vmatprep.mubr.bf16.mxu0 %v4266_v4 }
 0x1e7   : > { %v513_v8 = vpop.f32.mrb[0].mxu0 }
 0x1e8   : > { %v515_v9 = vpop.f32.mrb[1].mxu0  ;;  %v554_v10 = vpop.f32.mrb[0].mxu1 }
 0x1e9   : > { %v562_v11 = vcombine.low %v513_v8, %v515_v9  ;;  %v517_v12 = vpop.f32.mrb[2].mxu0  ;;  %566 = vst.msk [vmem:[#allocation3 + $0x8] sm:$0xf] %vm565_vm11, %v554_v10  ;;  %v3670_v13 = vpop.f32.mrb[1].mxu1 }
 0x1ea   : > { %v518_v14 = vpop.f32.mrb[3].mxu0  ;;  %v557_v15 = vpop.f32.mrb[2].mxu1 }
 0x1eb   : > { %v3671_v16 = vpop.f32.mrb[3].mxu1 }
 0x1f0   : > { %v690_v17 = vld [vmem:[#allocation3 + $0x8] sm:$0xf] }
 0x258   : > { %v683_v18 = vpop.f32.mrb[4].mxu1 }
 0x259   : > { %v696_v19 = vadd.f32 %v690_v17, %v683_v18  ;;  %v3676_v20 = vpop.f32.mrb[5].mxu1 }
 0x25a   : > { %v686_v21 = vpop.f32.mrb[6].mxu1 }
 0x25b   : > { %v642_v22 = vpop.f32.mrb[4].mxu0  ;;  %698 = vst.msk [vmem:[#allocation3 + $0x8] sm:$0xf] %vm565_vm11, %v696_v19  ;;  %v3677_v23 = vpop.f32.mrb[7].mxu1 }
 0x25c   : > { %v644_v24 = vpop.f32.mrb[5].mxu0 }
 0x25d   : > { %v693_v25 = vcombine.low %v642_v22, %v644_v24  ;;  %v646_v26 = vpop.f32.mrb[6].mxu0 }
 0x25e   : > { %v647_v27 = vpop.f32.mrb[7].mxu0 }
 0x25f   : > { %v695_v28 = vadd.f32 %v693_v25, %v562_v11 }
 0x260   : > { %v815_v29 = vpop.f32.mrb[8].mxu1 }
 0x261   : > { %v3682_v30 = vpop.f32.mrb[9].mxu1 }
 0x262   : > { %v822_v31 = vld [vmem:[#allocation3 + $0x8] sm:$0xf]  ;;  %v818_v32 = vpop.f32.mrb[10].mxu1 }
 0x263   : > { %v774_v33 = vpop.f32.mrb[8].mxu0  ;;  %v828_v34 = vadd.f32 %v822_v31, %v815_v29  ;;  %v3683_v35 = vpop.f32.mrb[11].mxu1 }
 0x264   : > { %v776_v36 = vpop.f32.mrb[9].mxu0 }
 0x265   : > { %v825_v37 = vcombine.low %v774_v33, %v776_v36  ;;  %v778_v38 = vpop.f32.mrb[10].mxu0  ;;  %830 = vst.msk [vmem:[#allocation3 + $0x8] sm:$0xf] %vm565_vm11, %v828_v34 }
 0x266   : > { %v779_v39 = vpop.f32.mrb[11].mxu0 }
 0x267   : > { %v827_v40 = vadd.f32 %v825_v37, %v695_v28 }
 0x268   : > { %v947_v41 = vpop.f32.mrb[12].mxu1 }
 0x269   : > { %v3688_v42 = vpop.f32.mrb[13].mxu1 }
 0x26a   : > { %v950_v43 = vpop.f32.mrb[14].mxu1 }
 0x26b   : > { %v906_v44 = vpop.f32.mrb[12].mxu0  ;;  %v3689_v45 = vpop.f32.mrb[15].mxu1 }
 0x26c   : > { %v954_v46 = vld [vmem:[#allocation3 + $0x8] sm:$0xf]  ;;  %v908_v47 = vpop.f32.mrb[13].mxu0  ;;  %v4798_v45 = vsub.s32 1, %v4634_v3 }
 0x26d   : > { %v957_v48 = vcombine.low %v906_v44, %v908_v47  ;;  %v910_v49 = vpop.f32.mrb[14].mxu0  ;;  %v960_v50 = vadd.f32 %v954_v46, %v947_v41  ;;  %v4795_v44 = vsub.s32 0, %v4634_v3 }
 0x26e   : > { %v911_v51 = vpop.f32.mrb[15].mxu0 }
 0x26f   : > { %v959_v52 = vadd.f32 %v957_v48, %v827_v40  ;;  %962 = vst.msk [vmem:[#allocation3 + $0x8] sm:$0xf] %vm565_vm11, %v960_v50  ;;  %v415_v48 = vld [vmem:[#allocation4] sm:$0x7] }
 0x270   : > { %v1079_v53 = vpop.f32.mrb[16].mxu1 }
 0x271   : > { %v3694_v54 = vpop.f32.mrb[17].mxu1 }
 0x272   : > { %v1082_v55 = vpop.f32.mrb[18].mxu1  ;;  %v1629_v54 = vrot.slane %v415_v48, %v4795_v44 }
 0x273   : > { %v1038_v56 = vpop.f32.mrb[16].mxu0  ;;  %v3695_v57 = vpop.f32.mrb[19].mxu1  ;;  %v1633_v55 = vrot.slane %v415_v48, %v4798_v45 }
 0x274   : > { %v1040_v58 = vpop.f32.mrb[17].mxu0 }
 0x275   : > { %v1089_v59 = vcombine.low %v1038_v56, %v1040_v58  ;;  %v1042_v60 = vpop.f32.mrb[18].mxu0  ;;  %v4803_v56 = vcombine.low %v1629_v54, %v1633_v55 }
 0x276   : > { %v1043_v61 = vpop.f32.mrb[19].mxu0  ;;  %v1086_v62 = vld [vmem:[#allocation3 + $0x8] sm:$0xf]  ;;  %v4808_v60 = vsub.s32 2, %v4634_v3 }
 0x277   : > { %v1091_v63 = vadd.f32 %v1089_v59, %v959_v52  ;;  %v1092_v0 = vadd.f32 %v1086_v62, %v1079_v53 }
 0x278   : > { %v1211_v1 = vpop.f32.mrb[20].mxu1  ;;  %v4811_v62 = vrot.slane %v415_v48, %v4808_v60 }
 0x279   : > { %1094 = vst.msk [vmem:[#allocation3 + $0x8] sm:$0xf] %vm565_vm11, %v1092_v0  ;;  %v3700_v2 = vpop.f32.mrb[21].mxu1 }
 0x27a   : > { %v1214_v5 = vpop.f32.mrb[22].mxu1 }
 0x27b   : > { %v1170_v8 = vpop.f32.mrb[20].mxu0  ;;  %v3701_v9 = vpop.f32.mrb[23].mxu1 }
 0x27c   : > { %v1172_v10 = vpop.f32.mrb[21].mxu0 }
 0x27d   : > { %v1221_v11 = vcombine.low %v1170_v8, %v1172_v10  ;;  %v1174_v12 = vpop.f32.mrb[22].mxu0  ;;  %v4277_v10 = vmov 839922192  }
 0x27e   : > { %v1175_v13 = vpop.f32.mrb[23].mxu0 }
 0x27f   : > { %v1223_v14 = vadd.f32 %v1221_v11, %v1091_v63  ;;  %v1657_v11 = vunpack.c.l.s4 %v4277_v10 }
 0x280   : > { %v1218_v15 = vld [vmem:[#allocation3 + $0x8] sm:$0xf]  ;;  %v1343_v16 = vpop.f32.mrb[24].mxu1 }
 0x281   : > { %v1224_v17 = vadd.f32 %v1218_v15, %v1211_v1  ;;  %v3706_v18 = vpop.f32.mrb[25].mxu1  ;;  %v1658_v12 = vunpack.c.0.s8 %v1657_v11 }
 0x282   : > { %v1346_v19 = vpop.f32.mrb[26].mxu1 }
 0x283   : > { %1226 = vst.msk [vmem:[#allocation3 + $0x8] sm:$0xf] %vm565_vm11, %v1224_v17  ;;  %v1302_v20 = vpop.f32.mrb[24].mxu0  ;;  %v3707_v21 = vpop.f32.mrb[27].mxu1  ;;  %v4818_v13 = vsub.s32 %v1658_v12, %v4634_v3 }
 0x284   : > { %v1304_v22 = vpop.f32.mrb[25].mxu0 }
 0x285   : > { %v1353_v23 = vcombine.low %v1302_v20, %v1304_v22  ;;  %v1306_v24 = vpop.f32.mrb[26].mxu0 }
 0x286   : > { %v1307_v25 = vpop.f32.mrb[27].mxu0 }
 0x287   : > { %v1355_v26 = vadd.f32 %v1353_v23, %v1223_v14 }
 0x288   : > { %v1475_v27 = vpop.f32.mrb[28].mxu1 }
 0x289   : > { %v3712_v28 = vpop.f32.mrb[29].mxu1 }
 0x28a   : > { %v1350_v29 = vld [vmem:[#allocation3 + $0x8] sm:$0xf]  ;;  %v1478_v30 = vpop.f32.mrb[30].mxu1 }
 0x28b   : > { %v1356_v31 = vadd.f32 %v1350_v29, %v1343_v16  ;;  %v1434_v32 = vpop.f32.mrb[28].mxu0  ;;  %v3713_v33 = vpop.f32.mrb[31].mxu1 }
 0x28c   : > { %v1436_v34 = vpop.f32.mrb[29].mxu0 }
 0x28d   : > { %1358 = vst.msk [vmem:[#allocation3 + $0x8] sm:$0xf] %vm565_vm11, %v1356_v31  ;;  %v1485_v35 = vcombine.low %v1434_v32, %v1436_v34  ;;  %v1438_v36 = vpop.f32.mrb[30].mxu0 }
 0x28e   : > { %v1439_v37 = vpop.f32.mrb[31].mxu0 }
 0x28f   : > { %v1487_v38 = vadd.f32 %v1485_v35, %v1355_v26 }
 0x290   : > { %v1607_v39 = vpop.f32.mrb[32].mxu1 }
 0x291   : > { %v3718_v40 = vpop.f32.mrb[33].mxu1 }
 0x292   : > { %v1610_v41 = vpop.f32.mrb[34].mxu1 }
 0x293   : > { %v1566_v42 = vpop.f32.mrb[32].mxu0  ;;  %v3719_v43 = vpop.f32.mrb[35].mxu1 }
 0x294   : > { %v1482_v46 = vld [vmem:[#allocation3 + $0x8] sm:$0xf]  ;;  %v1568_v47 = vpop.f32.mrb[33].mxu0 }
 0x295   : > { %v1488_v49 = vadd.f32 %v1482_v46, %v1475_v27  ;;  %v1617_v50 = vcombine.low %v1566_v42, %v1568_v47  ;;  %v1570_v51 = vpop.f32.mrb[34].mxu0 }
 0x296   : > { %v1571_v52 = vpop.f32.mrb[35].mxu0 }
 0x297   : > { %1490 = vst.msk [vmem:[#allocation3 + $0x8] sm:$0xf] %vm565_vm11, %v1488_v49  ;;  %v1619_v53 = vadd.f32 %v1617_v50, %v1487_v38 }
 0x299   : > { %v1641_v59 = vmul.f32 %v4803_v56, %v1619_v53 }
 0x29b   : > { %v1644_v61 = vcombine.high %v1641_v59, %v1641_v59  ;;  %v1647_v2 = vsel %vm5142_vm12, %v1641_v59, 0.0 }
 0x29d   : > { %v1648_v63 = vsel %vm5142_vm12, %v1644_v61, 0.0 }
 0x29e   : > { %v1614_v57 = vld [vmem:[#allocation3 + $0x8] sm:$0xf]  ;;  %v1649_v5 = vadd.f32 %v1648_v63, %v1647_v2 }
 0x29f   : > { %v1620_v58 = vadd.f32 %v1614_v57, %v1607_v39 }
 0x2a1   : > { %1622 = vst.msk [vmem:[#allocation3 + $0x8] sm:$0xf] %vm565_vm11, %v1620_v58  ;;  %v1727_v58 = vld [vmem:[#allocation7] sm:$0x7] }
 0x2a2   : > { %v1740_v59 = vrot.slane %v1727_v58, %v4808_v60  ;;  %v1732_v61 = vrot.slane %v1727_v58, %v4795_v44  ;;  %v1736_v63 = vrot.slane %v1727_v58, %v4798_v45 }
 0x2a4   : > { %v1746_v2 = vpack.c.bf16 %v1740_v59, %v1740_v59 }
 0x2a6   : > { %v1824_v12 = vpack.i.b16 %v1746_v2, %v1746_v2 }
 0x2a8   : > { %v1624_v0 = vld [vmem:[#allocation3 + $0x8] sm:$0xf] }
 0x2a9   : > { %v1642_v1 = vmul.f32 %v4811_v62, %v1624_v0 }
 0x2ab   : > { %v1650_v8 = vsel %vm565_vm11, %v1642_v1, 0.0 }
 0x2ac   : > { %v1651_v9 = vadd.f32 %v1650_v8, %v1649_v5  ;;  %v1744_v5 = vpack.c.bf16 %v1732_v61, %v1732_v61  ;;  %v1745_v8 = vpack.c.bf16 %v1736_v63, %v1736_v63 }
 0x2ae   : > { %1652 = vadd.xlane.f32.xlu0 %v1651_v9 }
 0x33b   : > { %v1653_v14 = vpop.xlane.xlu0 %1652 }
 0x33c   : > { %v1654_v15 = vmul.f32 0.00390625, %v1653_v14  ;;  %v1810_v14 = vpack.i.b16 %v1744_v5, %v1744_v5 }
 0x33e   : > { %v1662_v16 = vrot.slane %v1654_v15, %v4818_v13  ;;  %v1817_v15 = vpack.i.b16 %v1745_v8, %v1745_v8 }
 0x340   : > { %v1664_v17 = vsub.f32 %v1619_v53, %v1662_v16  ;;  %v1665_v18 = vsub.f32 %v1624_v0, %v1662_v16  ;;  %v1747_v0 = vld [vmem:[#allocation9] sm:$0x7] }
 0x341   : > { %v1752_v1 = vrot.slane %v1747_v0, %v4795_v44  ;;  %v1756_v9 = vrot.slane %v1747_v0, %v4798_v45  ;;  %v1760_v11 = vrot.slane %v1747_v0, %v4808_v60 }
 0x342   : > { %v1666_v19 = vmul.f32 %v1664_v17, %v4803_v56  ;;  %v1667_v20 = vmul.f32 %v1665_v18, %v4811_v62 }
 0x343   : > { %v1764_v10 = vpack.c.bf16 %v1752_v1, %v1752_v1  ;;  %v1765_v16 = vpack.c.bf16 %v1756_v9, %v1756_v9 }
 0x344   : > { %v1668_v21 = vmul.f32 %v1666_v19, %v1666_v19  ;;  %v1669_v22 = vmul.f32 %v1667_v20, %v1667_v20 }
 0x346   : > { %v1671_v23 = vcombine.high %v1668_v21, %v1668_v21  ;;  %v1673_v24 = vsel %vm5142_vm12, %v1668_v21, 0.0  ;;  %v1676_v3 = vsel %vm565_vm11, %v1669_v22, 0.0  ;;  %v1829_v21 = vrot.slane %v1824_v12, %v4795_v44 }
 0x347   : > { %v1815_v22 = vrot.slane %v1810_v14, %v4795_v44 }
 0x348   : > { %v1674_v25 = vsel %vm5142_vm12, %v1671_v23, 0.0  ;;  %vm4830_vm12 = vmor %vm1724_vm15, %vm1723_vm14  ;;  %v1822_v23 = vrot.slane %v1817_v15, %v4795_v44  ;;  %vm1972_vm14 = vcmask 7168   ;;  %vm2102_vm15 = vcmask 441344  }
 0x349   : > { %v1675_v26 = vadd.f32 %v1674_v25, %v1673_v24  ;;  %v1894_v24 = vpack.i.b16 %v1765_v16, %v1765_v16 }
 0x34b   : > { %v1677_v27 = vadd.f32 %v1676_v3, %v1675_v26 }
 0x34d   : > { %1678 = vadd.xlane.f32.xlu1 %v1677_v27 }
 0x3da   : > { %v1679_v28 = vpop.xlane.xlu1 %1678 }
 0x3db   : > { %v1680_v29 = vmul.f32 0.00390625, %v1679_v28 }
 0x3dd   : > { %v1681_v30 = vadd.f32 1e-05, %v1680_v29 }
 0x3df   : > { %3937 = vrsqrt.f32 %v1681_v30 }
 0x3e9   : > { %v3938_v31 = vpop.eup %3937 }
 0x3ea   : > { %v1690_v32 = vrot.slane %v3938_v31, %v4818_v13 }
 0x3ec   : > { %v1692_v33 = vmul.f32 %v1690_v32, %v1666_v19  ;;  %v1693_v34 = vmul.f32 %v1690_v32, %v1667_v20  ;;  %v1887_v19 = vpack.i.b16 %v1764_v10, %v1764_v10  ;;  %v1766_v20 = vpack.c.bf16 %v1760_v11, %v1760_v11 }
 0x3ee   : > { %v1694_v35 = vmax.f32 %v1692_v33, 0.0  ;;  %v1695_v36 = vmax.f32 %v1693_v34, 0.0  ;;  %v1892_v28 = vrot.slane %v1887_v19, %v4795_v44  ;;  %v1901_v29 = vpack.i.b16 %v1766_v20, %v1766_v20 }
 0x3ef   : > { %v1899_v33 = vrot.slane %v1894_v24, %v4795_v44 }
 0x3f0   : > { %v1697_v37 = vcombine.high %v1694_v35, %v1694_v35  ;;  %v1701_v38 = vpack.c.bf16 %v1695_v36, %v1695_v36 }
 0x3f2   : > { %v3599_v39 = vpack.c.bf16 %v1697_v37, %v1694_v35  ;;  %v1719_v41 = vrot.slane %v1701_v38, %v4640_v7 }
 0x3f4   : > { %v1712_v40 = vrot.slane %v3599_v39, %v4640_v7  ;;  %v1906_v39 = vrot.slane %v1901_v29, %v4795_v44 }
 0x3f6   : > { %v1720_v43 = vcombine.low %v1712_v40, %v1719_v41 }
 0x3f8   : > { %1726 = vst.msk [vmem:[#allocation2 + $0x2] sm:$0x3f] %vm4830_vm12, %v1720_v43 }
 0x3ff   : > { %v1808_v46 = vld [vmem:[#allocation2 + $0x2] sm:$0x3f] }
 0x400   : > { %v4836_v47 = vld [vmem:[#allocation2] sm:$0xff]  ;;  %v1838_v48 = vrot.slane %v1808_v46, %v4640_v7  ;;  %v1831_v50 = vcombine.high %v1808_v46, %v1808_v46 }
 0x401   : > { %v1915_v49 = vrot.slane %v4836_v47, %v4640_v7  ;;  %v1908_v53 = vcombine.high %v4836_v47, %v4836_v47 }
 0x402   : > { %1847 = vrot.lane.b32.xlu0 %v1838_v48, %s4269_s25  ;;  %v1845_v51 = vrot.slane %v1831_v50, %v4640_v7  ;;  %v1846_v52 = vcombine.high %v1838_v48, %v1838_v48 }
 0x403   : > { %1925 = vrot.lane.b32.xlu1 %v1915_v49, %s4278_s13  ;;  %v1923_v54 = vcombine.high %v1915_v49, %v1915_v49  ;;  %v1922_v55 = vrot.slane %v1908_v53, %v4640_v7 }
 0x405   : > { %v1924_v57 = vcombine.high %v1922_v55, %v1922_v55 }
 0x406   : > { %1851 = vrot.lane.b32.xlu0 %v1845_v51, %s4269_s25 }
 0x407   : > { %1849 = vrot.lane.b32.xlu1 %v1846_v52, %s4269_s25 }
 0x40a   : > { %1927 = vrot.lane.b32.xlu0 %v1923_v54, %s4278_s13 }
 0x40b   : > { %1929 = vrot.lane.b32.xlu1 %v1922_v55, %s4278_s13 }
 0x40e   : > { %1931 = vrot.lane.b32.xlu0 %v1924_v57, %s4278_s13 }
 0x474   : > { %v1848_v17 = vpop.permute.xlu0 %1847 }
 0x475   : > { %v1926_v18 = vpop.permute.xlu1 %1925 }
 0x478   : > { %v1852_v25 = vpop.permute.xlu0 %1851 }
 0x479   : > { %v1850_v26 = vpop.permute.xlu1 %1849  ;;  %v1860_v30 = vmul.bf16 %v1852_v25, %v1829_v21  ;;  %v1767_v21 = vld [vmem:[#allocation10] sm:$0x7] }
 0x47a   : > { %v1853_v3 = vsel %vm593_vm3, %v1848_v17, %v1850_v26  ;;  %v1854_v27 = vsel %vm593_vm3, %v1850_v26, %v1852_v25  ;;  %v1776_v24 = vrot.slane %v1767_v21, %v4798_v45  ;;  %v1787_v25 = vld [vmem:[#allocation12] sm:$0x7] }
 0x47b   : > { %v1858_v31 = vmul.bf16 %v1853_v3, %v1815_v22  ;;  %v1859_v32 = vmul.bf16 %v1854_v27, %v1822_v23  ;;  %v1878_v40 = vrot.slane %v1860_v30, %v4640_v7  ;;  %v1780_v22 = vrot.slane %v1767_v21, %v4808_v60 }
 0x47c   : > { %v1928_v35 = vpop.permute.xlu0 %1927  ;;  %v1772_v23 = vrot.slane %v1767_v21, %v4795_v44  ;;  %v1792_v26 = vrot.slane %v1787_v25, %v4795_v44  ;;  %v1796_v29 = vrot.slane %v1787_v25, %v4798_v45 }
 0x47d   : > { %v1864_v34 = vcombine.low %v1858_v31, %v1859_v32  ;;  %v1930_v36 = vpop.permute.xlu1 %1929  ;;  %v1934_v37 = vsel %vm1933_vm13, %v1926_v18, %v1928_v35  ;;  %v1786_v3 = vpack.c.bf16 %v1780_v22, %v1780_v22  ;;  %v1800_v31 = vrot.slane %v1787_v25, %v4808_v60 }
 0x47e   : > { %v1935_v38 = vsel %vm1933_vm13, %v1928_v35, %v1930_v36  ;;  %v1940_v41 = vmul.bf16 %v1934_v37, %v1892_v28  ;;  %v1784_v27 = vpack.c.bf16 %v1772_v23, %v1772_v23  ;;  %v1785_v28 = vpack.c.bf16 %v1776_v24, %v1776_v24 }
 0x47f   : > { %v1941_v43 = vmul.bf16 %v1935_v38, %v1899_v33  ;;  %v1871_v46 = vrot.slane %v1864_v34, %v4640_v7  ;;  %v1804_v30 = vpack.c.bf16 %v1792_v26, %v1792_v26  ;;  %v1993_v32 = vpack.i.b16 %v1786_v3, %v1786_v3 }
 0x480   : > { %v1932_v49 = vpop.permute.xlu0 %1931  ;;  %v1979_v33 = vpack.i.b16 %v1784_v27, %v1784_v27  ;;  %v1986_v34 = vpack.i.b16 %v1785_v28, %v1785_v28  ;;  %v1805_v35 = vpack.c.bf16 %v1796_v29, %v1796_v29 }
 0x481   : > { %v1946_v48 = vcombine.low %v1940_v41, %v1941_v43  ;;  %v1879_v50 = vcombine.low %v1871_v46, %v1878_v40  ;;  %v1936_v51 = vsel %vm1933_vm13, %v1930_v36, %v1932_v49  ;;  %v2056_v38 = vpack.i.b16 %v1804_v30, %v1804_v30 }
 0x482   : > { %v1942_v52 = vmul.bf16 %v1936_v51, %v1906_v39  ;;  %v1806_v39 = vpack.c.bf16 %v1800_v31, %v1800_v31  ;;  %v1998_v40 = vrot.slane %v1993_v32, %v4795_v44  ;;  %v1984_v41 = vrot.slane %v1979_v33, %v4795_v44 }
 0x483   : > { %1880 = vrot.lane.b32.xlu1 %v1879_v50, %s4269_s25  ;;  %v1953_v54 = vrot.slane %v1946_v48, %v4640_v7  ;;  %v1991_v43 = vrot.slane %v1986_v34, %v4795_v44  ;;  %v2063_v46 = vpack.i.b16 %v1805_v35, %v1805_v35  ;;  %v2061_v50 = vrot.slane %v2056_v38, %v4795_v44 }
 0x484   : > { %v1960_v53 = vrot.slane %v1942_v52, %v4640_v7  ;;  %v2070_v51 = vpack.i.b16 %v1806_v39, %v1806_v39  ;;  %vm2141_vm13 = vcmask 146432  }
 0x486   : > { %v1961_v55 = vcombine.low %v1953_v54, %v1960_v53 }
 0x488   : > { %1962 = vrot.lane.b32.xlu0 %v1961_v55, %s4269_s25  ;;  %v2068_v55 = vrot.slane %v2063_v46, %v4795_v44 }
 0x4f5   : > { %v1881_v57 = vpop.permute.xlu1 %1880 }
 0x4f6   : > { %v1882_v58 = vrot.slane %v1881_v57, 6 }
 0x4f8   : > { %v1883_v59 = vsel %vm593_vm3, %v1882_v58, %v1881_v57 }
 0x4f9   : > { %v1885_v0 = vadd.bf16 %v1883_v59, %v4836_v47 }
 0x4fa   : > { %v1963_v61 = vpop.permute.xlu0 %1962 }
 0x4fb   : > { %v1964_v63 = vrot.slane %v1963_v61, 6 }
 0x4fd   : > { %v1965_v1 = vsel %vm593_vm3, %v1964_v63, %v1963_v61 }
 0x4fe   : > { %v1967_v2 = vadd.bf16 %v1965_v1, %v1885_v0  ;;  %v2075_v0 = vrot.slane %v2070_v51, %v4795_v44 }
 0x500   : > { %1969 = vrot.lane.b32.xlu1 %v1967_v2, %s4279_s26 }
 0x572   : > { %v1970_v5 = vpop.permute.xlu1 %1969 }
 0x573   : > { %v1971_v8 = vrot.slane %v1970_v5, 2 }
 0x575   : > { %v1973_v9 = vsel %vm1972_vm14, %v1970_v5, %v1971_v8 }
 0x576   : > { %1975 = vst.msk [vmem:[#allocation2 + $0x2] sm:$0x3f] %vm4830_vm12, %v1973_v9 }
 0x57d   : > { %v1977_v10 = vld [vmem:[#allocation2 + $0x2] sm:$0x3f] }
 0x57e   : > { %v4876_v11 = vld [vmem:[#allocation2] sm:$0xff]  ;;  %v2007_v12 = vrot.slane %v1977_v10, %v4640_v7  ;;  %v2000_v14 = vcombine.high %v1977_v10, %v1977_v10 }
 0x57f   : > { %v2084_v47 = vrot.slane %v4876_v11, %v4640_v7  ;;  %v2077_v17 = vcombine.high %v4876_v11, %v4876_v11 }
 0x580   : > { %2016 = vrot.lane.b32.xlu0 %v2007_v12, %s4271_s18  ;;  %v2014_v15 = vrot.slane %v2000_v14, %v4640_v7  ;;  %v2015_v16 = vcombine.high %v2007_v12, %v2007_v12 }
 0x581   : > { %2094 = vrot.lane.b32.xlu1 %v2084_v47, %s4280_s12  ;;  %v2092_v18 = vcombine.high %v2084_v47, %v2084_v47  ;;  %v2091_v19 = vrot.slane %v2077_v17, %v4640_v7 }
 0x583   : > { %v2093_v20 = vcombine.high %v2091_v19, %v2091_v19 }
 0x584   : > { %2020 = vrot.lane.b32.xlu0 %v2014_v15, %s4271_s18 }
 0x585   : > { %2018 = vrot.lane.b32.xlu1 %v2015_v16, %s4271_s18 }
 0x588   : > { %2096 = vrot.lane.b32.xlu0 %v2092_v18, %s4280_s12 }
 0x589   : > { %2098 = vrot.lane.b32.xlu1 %v2091_v19, %s4280_s12 }
 0x58c   : > { %2100 = vrot.lane.b32.xlu0 %v2093_v20, %s4280_s12 }
 0x5f2   : > { %v2017_v36 = vpop.permute.xlu0 %2016 }
 0x5f3   : > { %v2095_v37 = vpop.permute.xlu1 %2094 }
 0x5f6   : > { %v2021_v48 = vpop.permute.xlu0 %2020 }
 0x5f7   : > { %v2019_v45 = vpop.permute.xlu1 %2018  ;;  %v2029_v52 = vmul.bf16 %v2021_v48, %v1998_v40  ;;  %v2145_v40 = vld [vmem:[#allocation16] sm:$0x3] }
 0x5f8   : > { %v2022_v60 = vsel %vm857_vm5, %v2017_v36, %v2019_v45  ;;  %v2023_v49 = vsel %vm857_vm5, %v2019_v45, %v2021_v48 }
 0x5f9   : > { %v2027_v53 = vmul.bf16 %v2022_v60, %v1984_v41  ;;  %v2028_v54 = vmul.bf16 %v2023_v49, %v1991_v43  ;;  %v2047_v1 = vrot.slane %v2029_v52, %v4640_v7 }
 0x5fa   : > { %v2097_v58 = vpop.permute.xlu0 %2096 }
 0x5fb   : > { %v2033_v57 = vcombine.low %v2027_v53, %v2028_v54  ;;  %v2099_v59 = vpop.permute.xlu1 %2098  ;;  %v2103_v61 = vsel %vm2102_vm15, %v2095_v37, %v2097_v58 }
 0x5fc   : > { %v2104_v63 = vsel %vm2102_vm15, %v2097_v58, %v2099_v59  ;;  %v2109_v2 = vmul.bf16 %v2103_v61, %v2061_v50 }
 0x5fd   : > { %v2110_v5 = vmul.bf16 %v2104_v63, %v2068_v55  ;;  %v2040_v8 = vrot.slane %v2033_v57, %v4640_v7 }
 0x5fe   : > { %v2101_v10 = vpop.permute.xlu0 %2100 }
 0x5ff   : > { %v2115_v9 = vcombine.low %v2109_v2, %v2110_v5  ;;  %v2048_v12 = vcombine.low %v2040_v8, %v2047_v1  ;;  %v2105_v47 = vsel %vm2102_vm15, %v2099_v59, %v2101_v10 }
 0x600   : > { %v2111_v14 = vmul.bf16 %v2105_v47, %v2075_v0 }
 0x601   : > { %2049 = vrot.lane.b32.xlu1 %v2048_v12, %s4271_s18  ;;  %v2122_v16 = vrot.slane %v2115_v9, %v4640_v7 }
 0x602   : > { %v2129_v15 = vrot.slane %v2111_v14, %v4640_v7 }
 0x604   : > { %v2130_v17 = vcombine.low %v2122_v16, %v2129_v15 }
 0x606   : > { %2131 = vrot.lane.b32.xlu0 %v2130_v17, %s4271_s18 }
 0x673   : > { %v2050_v44 = vpop.permute.xlu1 %2049 }
 0x674   : > { %v2051_v18 = vrot.slane %v2050_v44, 6 }
 0x676   : > { %v2052_v19 = vsel %vm857_vm5, %v2051_v18, %v2050_v44 }
 0x677   : > { %v2054_v22 = vadd.bf16 %v2052_v19, %v4876_v11 }
 0x678   : > { %v2132_v20 = vpop.permute.xlu0 %2131 }
 0x679   : > { %v2133_v21 = vrot.slane %v2132_v20, 6 }
 0x67b   : > { %v2134_v23 = vsel %vm857_vm5, %v2133_v21, %v2132_v20 }
 0x67c   : > { %v2136_v24 = vadd.bf16 %v2134_v23, %v2054_v22 }
 0x67e   : > { %2138 = vrot.lane.b32.xlu1 %v2136_v24, %s4281_s19 }
 0x6f0   : > { %v2139_v25 = vpop.permute.xlu1 %2138 }
 0x6f1   : > { %v2140_v26 = vrot.slane %v2139_v25, 2 }
 0x6f3   : > { %v2142_v3 = vsel %vm2141_vm13, %v2139_v25, %v2140_v26  ;;  %v2264_v26 = vld [vmem:[#allocation16 + $0x2] sm:$0x3] }
 0x6f4   : > { %2144 = vst.msk [vmem:[#allocation2 + $0x2] sm:$0x3f] %vm4830_vm12, %v2142_v3 }
 0x6fb   : > { %v2265_v27 = vld [vmem:[#allocation2 + $0x2] sm:$0x3f] }
 0x6fc   : > { %v2146_v28 = vld [vmem:[#allocation2 + $0x2] sm:$0x3f]  ;;  %v2274_v29 = vrot.slane %v2265_v27, %v4640_v7  ;;  %v2267_v11 = vcombine.high %v2265_v27, %v2265_v27 }
 0x6fd   : > { %v2155_v30 = vrot.slane %v2146_v28, %v4640_v7  ;;  %v2148_v31 = vcombine.high %v2146_v28, %v2146_v28  ;;  %v2396_v32 = vld [vmem:[#allocation2 + $0x2] sm:$0x3f] }
 0x6fe   : > { %2283 = vrot.lane.b32.xlu0 %v2274_v29, %s4269_s25  ;;  %v2282_v33 = vcombine.high %v2274_v29, %v2274_v29  ;;  %v2281_v37 = vrot.slane %v2267_v11, %v4640_v7  ;;  %v2405_v38 = vrot.slane %v2396_v32, %v4640_v7  ;;  %v2398_v39 = vcombine.high %v2396_v32, %v2396_v32  ;;  %v2527_v41 = vld [vmem:[#allocation2 + $0x2] sm:$0x3f]  ;;  %v2395_v32 = vld [vmem:[#allocation16 + $0x4] sm:$0x3] }
 0x6ff   : > { %v2163_v34 = vcombine.high %v2155_v30, %v2155_v30  ;;  %v2162_v35 = vrot.slane %v2148_v31, %v4640_v7  ;;  %v2168_v42 = vsel %vm469_vm1, %v2155_v30, 0  ;;  %v2536_v48 = vrot.slane %v2527_v41, %v4640_v7  ;;  %v2658_v60 = vld [vmem:[#allocation2 + $0x2] sm:$0x3f] }
 0x700   : > { %2285 = vrot.lane.b32.xlu1 %v2282_v33, %s4269_s25  ;;  %v2413_v43 = vcombine.high %v2405_v38, %v2405_v38  ;;  %v2412_v46 = vrot.slane %v2398_v39, %v4640_v7  ;;  %v2529_v45 = vcombine.high %v2527_v41, %v2527_v41  ;;  %v2667_v51 = vrot.slane %v2658_v60, %v4640_v7  ;;  %v2789_v53 = vld [vmem:[#allocation2 + $0x2] sm:$0x3f] }
 0x701   : > { %3600 = vmatprep.subr.msk.bf16.mxu0 %vm469_vm1, %v2163_v34  ;;  %v2174_v36 = vsel %vm469_vm1, %v2162_v35, 0  ;;  %v2544_v49 = vcombine.high %v2536_v48, %v2536_v48  ;;  %v2660_v52 = vcombine.high %v2658_v60, %v2658_v60  ;;  %v2798_v57 = vrot.slane %v2789_v53, %v4640_v7  ;;  %v2920_v59 = vld [vmem:[#allocation2 + $0x2] sm:$0x3f] }
 0x702   : > { %2177 = vmatpush1.bf16.msra.mxu0 %v2168_v42  ;;  %3721 = vmatpush3.bf16.msra.mxu1 %v2174_v36  ;;  %v2543_v50 = vrot.slane %v2529_v45, %v4640_v7  ;;  %v2675_v54 = vcombine.high %v2667_v51, %v2667_v51  ;;  %v2791_v58 = vcombine.high %v2789_v53, %v2789_v53  ;;  %v3051_v2 = vld [vmem:[#allocation2 + $0x2] sm:$0x3f] }
 0x703   : > { %2287 = vrot.lane.b32.xlu0 %v2281_v37, %s4269_s25  ;;  %3726 = vmatprep.subr.bf16.mxu1 %v4267_v6  ;;  %v2674_v55 = vrot.slane %v2660_v52, %v4640_v7  ;;  %v2806_v61 = vcombine.high %v2798_v57, %v2798_v57  ;;  %v2929_v0 = vrot.slane %v2920_v59, %v4640_v7  ;;  %v3182_v12 = vld [vmem:[#allocation2 + $0x2] sm:$0x3f]  ;;  %v2657_v52 = vld [vmem:[#allocation16 + $0x8] sm:$0x3]  ;;  %s4282_s25 = smov 19  }
 0x704   : > { %2414 = vrot.lane.b32.xlu1 %v2405_v38, %s4270_s16  ;;  %v2805_v63 = vrot.slane %v2791_v58, %v4640_v7  ;;  %v2922_v1 = vcombine.high %v2920_v59, %v2920_v59  ;;  %v3060_v9 = vrot.slane %v3051_v2, %v4640_v7  ;;  %v3053_v10 = vcombine.high %v3051_v2, %v3051_v2 }
 0x705   : > { %3723 = vmatmul.mubr.msk.bf16.vlgmr.msra.gmra.mrb[36].mxu1 %vm465_vm2, %v2145_v40  ;;  %3601 = vmatmul.mubr.msk.bf16.vlgmr.msra.gmra.mrb[36].mxu0 %vm465_vm2, %v2145_v40  ;;  %v2937_v5 = vcombine.high %v2929_v0, %v2929_v0  ;;  %v3191_v15 = vrot.slane %v3182_v12, %v4640_v7  ;;  %v3184_v16 = vcombine.high %v3182_v12, %v3182_v12  ;;  %v2526_v40 = vld [vmem:[#allocation16 + $0x6] sm:$0x3]  ;;  %v2919_v12 = vld [vmem:[#allocation16 + $0xc] sm:$0x3] }
 0x706   : > { %3728 = vmatprep.mubr.msk.bf16.mxu1 %vm4268_vm0, %v4267_v6  ;;  %2335 = vmatprep.mubr.bf16.mxu0 %v4266_v4  ;;  %v2936_v8 = vrot.slane %v2922_v1, %v4640_v7  ;;  %v3068_v47 = vcombine.high %v3060_v9, %v3060_v9  ;;  %v3067_v14 = vrot.slane %v3053_v10, %v4640_v7 }
 0x707   : > { %2416 = vrot.lane.b32.xlu0 %v2413_v43, %s4270_s16  ;;  %v3199_v17 = vcombine.high %v3191_v15, %v3191_v15  ;;  %v3198_v44 = vrot.slane %v3184_v16, %v4640_v7 }
 0x708   : > { %2418 = vrot.lane.b32.xlu1 %v2412_v46, %s4270_s16  ;;  %s3777_s16 = smul.u32 192, %s4350_s11  ;;  %s3399_s11 = scalar_lea.sflag [#allocation6], %s371_s22 }
 0x70b   : > { %2545 = vrot.lane.b32.xlu0 %v2536_v48, %s4271_s18 }
 0x70c   : > { %2547 = vrot.lane.b32.xlu1 %v2544_v49, %s4271_s18 }
 0x70f   : > { %2549 = vrot.lane.b32.xlu0 %v2543_v50, %s4271_s18  ;;  %s413_s18 = scalar_lea.vmem [#allocation18], %s4617_s15 }
 0x710   : > { %2676 = vrot.lane.b32.xlu1 %v2667_v51, %s4272_s20 }
 0x713   : > { %2678 = vrot.lane.b32.xlu0 %v2675_v54, %s4272_s20 }
 0x714   : > { %2680 = vrot.lane.b32.xlu1 %v2674_v55, %s4272_s20 }
 0x717   : > { %2807 = vrot.lane.b32.xlu0 %v2798_v57, %s4273_s24 }
 0x718   : > { %2809 = vrot.lane.b32.xlu1 %v2806_v61, %s4273_s24 }
 0x71b   : > { %2811 = vrot.lane.b32.xlu0 %v2805_v63, %s4273_s24  ;;  %s3413_s24 = sshll.u32 %s413_s18, 4  ;;  %s5086_s24 = int_to_ptr.vmem [resolvable:$true] %s3413_s24 }
 0x71c   : > { %2938 = vrot.lane.b32.xlu1 %v2929_v0, %s4274_s14  ;;  %v2788_v0 = vld [vmem:[#allocation16 + $0xa] sm:$0x3]  ;;  %s4167_s15 = scalar_lea.vmem %s5086_s24, 192 }
 0x71d   : > { %p4168_p7 = scmp.ne.s32.totalorder %s5086_s24, %s4167_s15 }
 0x71f   : > { %2940 = vrot.lane.b32.xlu0 %v2937_v5, %s4274_s14  ;;  %p4169_p2 = pnand %p4168_p7, %p5173_p3 }
 0x720   : > { %2942 = vrot.lane.b32.xlu1 %v2936_v8, %s4274_s14 }
 0x721   : > { %p4170_p0 = pneg %p4169_p2 }
 0x723   : > { %3069 = vrot.lane.b32.xlu0 %v3060_v9, %s4275_s1 }
 0x724   : > { %3071 = vrot.lane.b32.xlu1 %v3068_v47, %s4275_s1 }
 0x727   : > { %3073 = vrot.lane.b32.xlu0 %v3067_v14, %s4275_s1  ;;  %s4283_s1 = smov [#allocation18]  }
 0x728   : > { %3200 = vrot.lane.b32.xlu1 %v3191_v15, %s4276_s21 }
 0x72b   : > { %3202 = vrot.lane.b32.xlu0 %v3199_v17, %s4276_s21 }
 0x72c   : > { %3204 = vrot.lane.b32.xlu1 %v3198_v44, %s4276_s21  ;;  %s4171_s21 = sshll.u32 %s4283_s1, 4  ;;  %s4172_s21 = int_to_ptr.vmem [resolvable:$false] %s4171_s21 }
 0x72d   : > { %s4173_s13 = scalar_lea.vmem %s4172_s21, 384  ;;  %p4174_p8 = scmp.lt.s32.totalorder %s5086_s24, %s4172_s21 }
 0x72e   : > { %p4175_p5 = scmp.lt.s32.totalorder %s4173_s13, %s4167_s15 }
 0x730   : > { %p4176_p9 = por %p4175_p5, %p4174_p8 }
 0x732   : > { %p4177_p6 = pnand %p4176_p9, %p4170_p0 }
 0x770   : > { %v2284_v18 = vpop.permute.xlu0 %2283 }
 0x772   : > { %v2286_v19 = vpop.permute.xlu1 %2285 }
 0x773   : > { %v2289_v20 = vsel %vm593_vm3, %v2284_v18, %v2286_v19  ;;  %v3050_v18 = vld [vmem:[#allocation16 + $0xe] sm:$0x3] }
 0x774   : > { %v2295_v24 = vsel %vm469_vm1, %v2289_v20, 0 }
 0x775   : > { %v2288_v21 = vpop.permute.xlu0 %2287 }
 0x776   : > { %v2290_v22 = vsel %vm593_vm3, %v2286_v19, %v2288_v21  ;;  %v2301_v23 = vsel %vm469_vm1, %v2288_v21, 0  ;;  %v2415_v25 = vpop.permute.xlu1 %2414 }
 0x777   : > { %3603 = vmatprep.subr.msk.bf16.mxu0 %vm469_vm1, %v2290_v22  ;;  %3727 = vmatpush3.bf16.msra.mxu1 %v2301_v23  ;;  %v3181_v22 = vld [vmem:[#allocation16 + $0x10] sm:$0x3] }
 0x778   : > { %2304 = vmatpush1.bf16.msra.mxu0 %v2295_v24  ;;  %3732 = vmatprep.subr.bf16.mxu1 %v4267_v6 }
 0x779   : > { %v2417_v7 = vpop.permute.xlu0 %2416 }
 0x77a   : > { %v2420_v3 = vsel %vm725_vm4, %v2415_v25, %v2417_v7  ;;  %3729 = vmatmul.mubr.msk.bf16.vlgmr.msra.gmra.mrb[40].mxu1 %vm465_vm2, %v2264_v26  ;;  %v2419_v27 = vpop.permute.xlu1 %2418 }
 0x77b   : > { %3604 = vmatmul.mubr.msk.bf16.vlgmr.msra.gmra.mrb[40].mxu0 %vm465_vm2, %v2264_v26  ;;  %3734 = vmatprep.mubr.msk.bf16.mxu1 %vm4268_vm0, %v4267_v6  ;;  %v2421_v28 = vsel %vm725_vm4, %v2417_v7, %v2419_v27  ;;  %v2432_v29 = vsel %vm469_vm1, %v2419_v27, 0  ;;  %v2426_v30 = vsel %vm469_vm1, %v2420_v3, 0  ;;  %vm3374_vm4 = vcmask 154624  }
 0x77c   : > { %2466 = vmatprep.mubr.bf16.mxu0 %v4266_v4  ;;  %3606 = vmatprep.subr.msk.bf16.mxu0 %vm469_vm1, %v2421_v28 }
 0x77d   : > { %v2546_v31 = vpop.permute.xlu0 %2545  ;;  %3733 = vmatpush3.bf16.msra.mxu1 %v2432_v29  ;;  %2435 = vmatpush1.bf16.msra.mxu0 %v2426_v30 }
 0x77e   : > { %3738 = vmatprep.subr.bf16.mxu1 %v4267_v6  ;;  %v2548_v11 = vpop.permute.xlu1 %2547 }
 0x77f   : > { %v2551_v33 = vsel %vm857_vm5, %v2546_v31, %v2548_v11 }
 0x780   : > { %v2557_v36 = vsel %vm469_vm1, %v2551_v33, 0 }
 0x781   : > { %v2550_v34 = vpop.permute.xlu0 %2549 }
 0x782   : > { %v2552_v35 = vsel %vm857_vm5, %v2548_v11, %v2550_v34  ;;  %v2563_v42 = vsel %vm469_vm1, %v2550_v34, 0  ;;  %3735 = vmatmul.mubr.msk.bf16.vlgmr.msra.gmra.mrb[44].mxu1 %vm465_vm2, %v2395_v32  ;;  %v2677_v37 = vpop.permute.xlu1 %2676  ;;  %vm3396_vm5 = vcmask 1044000  }
 0x783   : > { %3607 = vmatmul.mubr.msk.bf16.vlgmr.msra.gmra.mrb[44].mxu0 %vm465_vm2, %v2395_v32  ;;  %3609 = vmatprep.subr.msk.bf16.mxu0 %vm469_vm1, %v2552_v35 }
 0x784   : > { %3739 = vmatpush3.bf16.msra.mxu1 %v2563_v42  ;;  %2566 = vmatpush1.bf16.msra.mxu0 %v2557_v36 }
 0x785   : > { %v2679_v38 = vpop.permute.xlu0 %2678  ;;  %3740 = vmatprep.mubr.msk.bf16.mxu1 %vm4268_vm0, %v4267_v6  ;;  %3744 = vmatprep.subr.bf16.mxu1 %v4267_v6 }
 0x786   : > { %2597 = vmatprep.mubr.bf16.mxu0 %v4266_v4  ;;  %v2681_v39 = vpop.permute.xlu1 %2680  ;;  %v2682_v41 = vsel %vm989_vm6, %v2677_v37, %v2679_v38 }
 0x787   : > { %v2683_v43 = vsel %vm989_vm6, %v2679_v38, %v2681_v39  ;;  %v2694_v46 = vsel %vm469_vm1, %v2681_v39, 0  ;;  %v2688_v45 = vsel %vm469_vm1, %v2682_v41, 0 }
 0x788   : > { %3612 = vmatprep.subr.msk.bf16.mxu0 %vm469_vm1, %v2683_v43 }
 0x789   : > { %v2808_v48 = vpop.permute.xlu0 %2807 }
 0x78a   : > { %3741 = vmatmul.mubr.msk.bf16.vlgmr.msra.gmra.mrb[48].mxu1 %vm465_vm2, %v2526_v40  ;;  %v2810_v60 = vpop.permute.xlu1 %2809 }
 0x78b   : > { %3745 = vmatpush3.bf16.msra.mxu1 %v2694_v46  ;;  %3610 = vmatmul.mubr.msk.bf16.vlgmr.msra.gmra.mrb[48].mxu0 %vm465_vm2, %v2526_v40  ;;  %v2813_v53 = vsel %vm1121_vm7, %v2808_v48, %v2810_v60 }
 0x78c   : > { %2697 = vmatpush1.bf16.msra.mxu0 %v2688_v45  ;;  %3746 = vmatprep.mubr.msk.bf16.mxu1 %vm4268_vm0, %v4267_v6  ;;  %v2819_v57 = vsel %vm469_vm1, %v2813_v53, 0 }
 0x78d   : > { %v2812_v49 = vpop.permute.xlu0 %2811  ;;  %3750 = vmatprep.subr.bf16.mxu1 %v4267_v6  ;;  %2728 = vmatprep.mubr.bf16.mxu0 %v4266_v4 }
 0x78e   : > { %v2814_v50 = vsel %vm1121_vm7, %v2810_v60, %v2812_v49  ;;  %v2939_v51 = vpop.permute.xlu1 %2938  ;;  %v2825_v55 = vsel %vm469_vm1, %v2812_v49, 0 }
 0x78f   : > { %3615 = vmatprep.subr.msk.bf16.mxu0 %vm469_vm1, %v2814_v50 }
 0x791   : > { %v2941_v54 = vpop.permute.xlu0 %2940 }
 0x792   : > { %3747 = vmatmul.mubr.msk.bf16.vlgmr.msra.gmra.mrb[52].mxu1 %vm465_vm2, %v2657_v52  ;;  %v2943_v58 = vpop.permute.xlu1 %2942  ;;  %v2944_v1 = vsel %vm1253_vm8, %v2939_v51, %v2941_v54 }
 0x793   : > { %3751 = vmatpush3.bf16.msra.mxu1 %v2825_v55  ;;  %3613 = vmatmul.mubr.msk.bf16.vlgmr.msra.gmra.mrb[52].mxu0 %vm465_vm2, %v2657_v52  ;;  %v2945_v59 = vsel %vm1253_vm8, %v2941_v54, %v2943_v58  ;;  %v2956_v5 = vsel %vm469_vm1, %v2943_v58, 0  ;;  %v2950_v9 = vsel %vm469_vm1, %v2944_v1, 0 }
 0x794   : > { %2828 = vmatpush1.bf16.msra.mxu0 %v2819_v57  ;;  %3752 = vmatprep.mubr.msk.bf16.mxu1 %vm4268_vm0, %v4267_v6 }
 0x795   : > { %v3070_v61 = vpop.permute.xlu0 %3069  ;;  %3618 = vmatprep.subr.msk.bf16.mxu0 %vm469_vm1, %v2945_v59  ;;  %3756 = vmatprep.subr.bf16.mxu1 %v4267_v6 }
 0x796   : > { %2859 = vmatprep.mubr.bf16.mxu0 %v4266_v4  ;;  %v3072_v63 = vpop.permute.xlu1 %3071 }
 0x797   : > { %v3075_v47 = vsel %vm1385_vm9, %v3070_v61, %v3072_v63 }
 0x798   : > { %v3081_v16 = vsel %vm469_vm1, %v3075_v47, 0 }
 0x799   : > { %v3074_v2 = vpop.permute.xlu0 %3073 }
 0x79a   : > { %v3076_v8 = vsel %vm1385_vm9, %v3072_v63, %v3074_v2  ;;  %3753 = vmatmul.mubr.msk.bf16.vlgmr.msra.gmra.mrb[56].mxu1 %vm465_vm2, %v2788_v0  ;;  %v3201_v10 = vpop.permute.xlu1 %3200  ;;  %v3087_v15 = vsel %vm469_vm1, %v3074_v2, 0 }
 0x79b   : > { %3757 = vmatpush3.bf16.msra.mxu1 %v2956_v5  ;;  %3616 = vmatmul.mubr.msk.bf16.vlgmr.msra.gmra.mrb[56].mxu0 %vm465_vm2, %v2788_v0 }
 0x79c   : > { %2959 = vmatpush1.bf16.msra.mxu0 %v2950_v9  ;;  %3758 = vmatprep.mubr.msk.bf16.mxu1 %vm4268_vm0, %v4267_v6 }
 0x79d   : > { %3621 = vmatprep.subr.msk.bf16.mxu0 %vm469_vm1, %v3076_v8  ;;  %3762 = vmatprep.subr.bf16.mxu1 %v4267_v6  ;;  %v3203_v17 = vpop.permute.xlu0 %3202 }
 0x79e   : > { %2990 = vmatprep.mubr.bf16.mxu0 %v4266_v4  ;;  %v3205_v14 = vpop.permute.xlu1 %3204  ;;  %v3206_v19 = vsel %vm1517_vm10, %v3201_v10, %v3203_v17 }
 0x79f   : > { %v3207_v44 = vsel %vm1517_vm10, %v3203_v17, %v3205_v14  ;;  %v3218_v20 = vsel %vm469_vm1, %v3205_v14, 0  ;;  %v3212_v21 = vsel %vm469_vm1, %v3206_v19, 0 }
 0x7a2   : > { %3759 = vmatmul.mubr.msk.bf16.vlgmr.msra.gmra.mrb[60].mxu1 %vm465_vm2, %v2919_v12 }
 0x7a3   : > { %3763 = vmatpush3.bf16.msra.mxu1 %v3087_v15  ;;  %3619 = vmatmul.mubr.msk.bf16.vlgmr.msra.gmra.mrb[60].mxu0 %vm465_vm2, %v2919_v12 }
 0x7a4   : > { %3090 = vmatpush1.bf16.msra.mxu0 %v3081_v16  ;;  %3764 = vmatprep.mubr.msk.bf16.mxu1 %vm4268_vm0, %v4267_v6 }
 0x7a5   : > { %3624 = vmatprep.subr.msk.bf16.mxu0 %vm469_vm1, %v3207_v44  ;;  %3768 = vmatprep.subr.bf16.mxu1 %v4267_v6 }
 0x7a6   : > { %3121 = vmatprep.mubr.bf16.mxu0 %v4266_v4 }
 0x7aa   : > { %3765 = vmatmul.mubr.msk.bf16.vlgmr.msra.gmra.mrb[64].mxu1 %vm465_vm2, %v3050_v18 }
 0x7ab   : > { %3769 = vmatpush3.bf16.msra.mxu1 %v3218_v20  ;;  %3622 = vmatmul.mubr.msk.bf16.vlgmr.msra.gmra.mrb[64].mxu0 %vm465_vm2, %v3050_v18 }
 0x7ac   : > { %3221 = vmatpush1.bf16.msra.mxu0 %v3212_v21  ;;  %3252 = vmatprep.mubr.bf16.mxu0 %v4266_v4 }
 0x7ad   : > { %3770 = vmatprep.mubr.msk.bf16.mxu1 %vm4268_vm0, %v4267_v6  ;;  %vm5168_vm0 = vcmask 1043456  }
 0x7ae   : > { %vm5169_vm1 = vmmov %vm5168_vm0 }
 0x7af   : > { %vm5171_vm3 = vmmov %vm5168_vm0 }
 0x7b0   : > { %vm5172_vm7 = vmmov %vm5168_vm0 }
 0x7b2   : > { %3771 = vmatmul.mubr.msk.bf16.vlgmr.msra.gmra.mrb[68].mxu1 %vm465_vm2, %v3181_v22 }
 0x7b3   : > { %3625 = vmatmul.mubr.msk.bf16.vlgmr.msra.gmra.mrb[68].mxu0 %vm465_vm2, %v3181_v22  ;;  %vm5170_vm2 = vmmov %vm5168_vm0 }
 0x7d8   : > { %v2210_v23 = vpop.f32.mrb[36].mxu0  ;;  %v2251_v24 = vpop.f32.mrb[36].mxu1 }
 0x7d9   : > { %v2212_v25 = vpop.f32.mrb[37].mxu0  ;;  %2262 = vst.msk [vmem:[#allocation3 + $0x8] sm:$0xf] %vm565_vm11, %v2251_v24  ;;  %v3724_v26 = vpop.f32.mrb[37].mxu1 }
 0x7da   : > { %v2259_v7 = vcombine.low %v2210_v23, %v2212_v25  ;;  %v2214_v3 = vpop.f32.mrb[38].mxu0  ;;  %v2254_v27 = vpop.f32.mrb[38].mxu1 }
 0x7db   : > { %v2215_v28 = vpop.f32.mrb[39].mxu0  ;;  %v3725_v29 = vpop.f32.mrb[39].mxu1 }
 0x7e0   : > { %v2385_v4 = vld [vmem:[#allocation3 + $0x8] sm:$0xf] }
 0x84d   : > { %v2378_v30 = vpop.f32.mrb[40].mxu1 }
 0x84e   : > { %v2337_v31 = vpop.f32.mrb[40].mxu0  ;;  %v2391_v11 = vadd.f32 %v2385_v4, %v2378_v30  ;;  %v3730_v32 = vpop.f32.mrb[41].mxu1 }
 0x84f   : > { %v2339_v33 = vpop.f32.mrb[41].mxu0  ;;  %v2381_v34 = vpop.f32.mrb[42].mxu1 }
 0x850   : > { %v2388_v35 = vcombine.low %v2337_v31, %v2339_v33  ;;  %v2341_v42 = vpop.f32.mrb[42].mxu0  ;;  %2393 = vst.msk [vmem:[#allocation3 + $0x8] sm:$0xf] %vm565_vm11, %v2391_v11  ;;  %v3731_v36 = vpop.f32.mrb[43].mxu1 }
 0x851   : > { %v2342_v37 = vpop.f32.mrb[43].mxu0 }
 0x852   : > { %v2390_v38 = vadd.f32 %v2388_v35, %v2259_v7 }
 0x855   : > { %v2509_v39 = vpop.f32.mrb[44].mxu1 }
 0x856   : > { %v2468_v40 = vpop.f32.mrb[44].mxu0  ;;  %v3736_v41 = vpop.f32.mrb[45].mxu1 }
 0x857   : > { %v2470_v43 = vpop.f32.mrb[45].mxu0  ;;  %v2516_v46 = vld [vmem:[#allocation3 + $0x8] sm:$0xf]  ;;  %v2512_v48 = vpop.f32.mrb[46].mxu1 }
 0x858   : > { %v2519_v45 = vcombine.low %v2468_v40, %v2470_v43  ;;  %v2472_v60 = vpop.f32.mrb[46].mxu0  ;;  %v2522_v49 = vadd.f32 %v2516_v46, %v2509_v39  ;;  %v3737_v50 = vpop.f32.mrb[47].mxu1 }
 0x859   : > { %v2473_v51 = vpop.f32.mrb[47].mxu0 }
 0x85a   : > { %v2521_v52 = vadd.f32 %v2519_v45, %v2390_v38  ;;  %2524 = vst.msk [vmem:[#allocation3 + $0x8] sm:$0xf] %vm565_vm11, %v2522_v49 }
 0x85d   : > { %v2640_v53 = vpop.f32.mrb[48].mxu1 }
 0x85e   : > { %v2599_v54 = vpop.f32.mrb[48].mxu0  ;;  %v3742_v55 = vpop.f32.mrb[49].mxu1 }
 0x85f   : > { %v2601_v57 = vpop.f32.mrb[49].mxu0  ;;  %v2643_v58 = vpop.f32.mrb[50].mxu1 }
 0x860   : > { %v2650_v59 = vcombine.low %v2599_v54, %v2601_v57  ;;  %v2603_v61 = vpop.f32.mrb[50].mxu0  ;;  %v3743_v63 = vpop.f32.mrb[51].mxu1 }
 0x861   : > { %v2604_v0 = vpop.f32.mrb[51].mxu0  ;;  %v2647_v1 = vld [vmem:[#allocation3 + $0x8] sm:$0xf] }
 0x862   : > { %v2652_v2 = vadd.f32 %v2650_v59, %v2521_v52  ;;  %v2653_v5 = vadd.f32 %v2647_v1, %v2640_v53 }
 0x864   : > { %2655 = vst.msk [vmem:[#allocation3 + $0x8] sm:$0xf] %vm565_vm11, %v2653_v5 }
 0x865   : > { %v2771_v8 = vpop.f32.mrb[52].mxu1 }
 0x866   : > { %v2730_v9 = vpop.f32.mrb[52].mxu0  ;;  %v3748_v10 = vpop.f32.mrb[53].mxu1 }
 0x867   : > { %v2732_v12 = vpop.f32.mrb[53].mxu0  ;;  %v2774_v47 = vpop.f32.mrb[54].mxu1 }
 0x868   : > { %v2781_v14 = vcombine.low %v2730_v9, %v2732_v12  ;;  %v2734_v15 = vpop.f32.mrb[54].mxu0  ;;  %v3749_v16 = vpop.f32.mrb[55].mxu1 }
 0x869   : > { %v2735_v17 = vpop.f32.mrb[55].mxu0 }
 0x86a   : > { %v2783_v44 = vadd.f32 %v2781_v14, %v2652_v2 }
 0x86b   : > { %v2778_v18 = vld [vmem:[#allocation3 + $0x8] sm:$0xf] }
 0x86c   : > { %v2784_v19 = vadd.f32 %v2778_v18, %v2771_v8 }
 0x86d   : > { %v2902_v20 = vpop.f32.mrb[56].mxu1 }
 0x86e   : > { %2786 = vst.msk [vmem:[#allocation3 + $0x8] sm:$0xf] %vm565_vm11, %v2784_v19  ;;  %v2861_v21 = vpop.f32.mrb[56].mxu0  ;;  %v3754_v22 = vpop.f32.mrb[57].mxu1 }
 0x86f   : > { %v2863_v23 = vpop.f32.mrb[57].mxu0  ;;  %v2905_v24 = vpop.f32.mrb[58].mxu1 }
 0x870   : > { %v2912_v25 = vcombine.low %v2861_v21, %v2863_v23  ;;  %v2865_v26 = vpop.f32.mrb[58].mxu0  ;;  %v3755_v7 = vpop.f32.mrb[59].mxu1 }
 0x871   : > { %v2866_v3 = vpop.f32.mrb[59].mxu0 }
 0x872   : > { %v2914_v27 = vadd.f32 %v2912_v25, %v2783_v44 }
 0x875   : > { %v2909_v28 = vld [vmem:[#allocation3 + $0x8] sm:$0xf]  ;;  %v3033_v29 = vpop.f32.mrb[60].mxu1 }
 0x876   : > { %v2915_v4 = vadd.f32 %v2909_v28, %v2902_v20  ;;  %v2992_v30 = vpop.f32.mrb[60].mxu0  ;;  %v3760_v31 = vpop.f32.mrb[61].mxu1 }
 0x877   : > { %v2994_v11 = vpop.f32.mrb[61].mxu0  ;;  %v3036_v32 = vpop.f32.mrb[62].mxu1 }
 0x878   : > { %2917 = vst.msk [vmem:[#allocation3 + $0x8] sm:$0xf] %vm565_vm11, %v2915_v4  ;;  %v3043_v33 = vcombine.low %v2992_v30, %v2994_v11  ;;  %v2996_v34 = vpop.f32.mrb[62].mxu0  ;;  %v3761_v35 = vpop.f32.mrb[63].mxu1 }
 0x879   : > { %v2997_v42 = vpop.f32.mrb[63].mxu0  ;;  %v3365_v34 = vld [vmem:[%s4620_s17] sm:$0xff] }
 0x87a   : > { %v3045_v36 = vadd.f32 %v3043_v33, %v2914_v27  ;;  %v3366_v42 = vld [vmem:[%s4620_s17 + $0x8] sm:$0xf] }
 0x87d   : > { %v3164_v37 = vpop.f32.mrb[64].mxu1 }
 0x87e   : > { %v3123_v38 = vpop.f32.mrb[64].mxu0  ;;  %v3766_v39 = vpop.f32.mrb[65].mxu1 }
 0x87f   : > { %v3040_v40 = vld [vmem:[#allocation3 + $0x8] sm:$0xf]  ;;  %v3125_v41 = vpop.f32.mrb[65].mxu0  ;;  %v3167_v43 = vpop.f32.mrb[66].mxu1 }
 0x880   : > { %v3046_v46 = vadd.f32 %v3040_v40, %v3033_v29  ;;  %v3174_v48 = vcombine.low %v3123_v38, %v3125_v41  ;;  %v3127_v45 = vpop.f32.mrb[66].mxu0  ;;  %v3767_v60 = vpop.f32.mrb[67].mxu1 }
 0x881   : > { %v3128_v49 = vpop.f32.mrb[67].mxu0 }
 0x882   : > { %3048 = vst.msk [vmem:[#allocation3 + $0x8] sm:$0xf] %vm565_vm11, %v3046_v46  ;;  %v3176_v50 = vadd.f32 %v3174_v48, %v3045_v36 }
 0x885   : > { %v3295_v51 = vpop.f32.mrb[68].mxu1 }
 0x886   : > { %v3254_v52 = vpop.f32.mrb[68].mxu0  ;;  %v3772_v53 = vpop.f32.mrb[69].mxu1 }
 0x887   : > { %v3256_v54 = vpop.f32.mrb[69].mxu0  ;;  %v3298_v55 = vpop.f32.mrb[70].mxu1 }
 0x888   : > { %v3305_v57 = vcombine.low %v3254_v52, %v3256_v54  ;;  %v3258_v58 = vpop.f32.mrb[70].mxu0  ;;  %v3773_v59 = vpop.f32.mrb[71].mxu1 }
 0x889   : > { %v3171_v61 = vld [vmem:[#allocation3 + $0x8] sm:$0xf]  ;;  %v3259_v63 = vpop.f32.mrb[71].mxu0 }
 0x88a   : > { %v3177_v0 = vadd.f32 %v3171_v61, %v3164_v37  ;;  %v3307_v1 = vadd.f32 %v3305_v57, %v3176_v50 }
 0x88c   : > { %3179 = vst.msk [vmem:[#allocation3 + $0x8] sm:$0xf] %vm565_vm11, %v3177_v0  ;;  %v3313_v8 = vmul.f32 %v3307_v1, %v4803_v56 }
 0x88e   : > { %v3316_v9 = vcombine.high %v3313_v8, %v3313_v8  ;;  %v3318_v14 = vsel %vm5169_vm1, %v3313_v8, 0.0 }
 0x890   : > { %v3319_v10 = vsel %vm5168_vm0, %v3316_v9, 0.0 }
 0x891   : > { %v3320_v15 = vadd.f32 %v3319_v10, %v3318_v14 }
 0x893   : > { %v3302_v2 = vld [vmem:[#allocation3 + $0x8] sm:$0xf] }
 0x894   : > { %v3308_v5 = vadd.f32 %v3302_v2, %v3295_v51 }
 0x896   : > { %3310 = vst.msk [vmem:[#allocation3 + $0x8] sm:$0xf] %vm565_vm11, %v3308_v5 }
 0x89d   : > { %v3312_v12 = vld [vmem:[#allocation3 + $0x8] sm:$0xf] }
 0x89e   : > { %v3314_v47 = vmul.f32 %v3312_v12, %v4811_v62 }
 0x8a0   : > { %v3321_v16 = vsel %vm565_vm11, %v3314_v47, 0.0 }
 0x8a1   : > { %v3322_v17 = vadd.f32 %v3321_v16, %v3320_v15 }
 0x8a3   : > { %3323 = vadd.xlane.f32.xlu0 %v3322_v17 }
 0x930   : > { %v3324_v44 = vpop.xlane.xlu0 %3323 }
 0x931   : > { %v3325_v18 = vmul.f32 0.00390625, %v3324_v44 }
 0x933   : > { %v3333_v19 = vrot.slane %v3325_v18, %v4818_v13 }
 0x935   : > { %v3335_v20 = vsub.f32 %v3307_v1, %v3333_v19  ;;  %v3336_v21 = vsub.f32 %v3312_v12, %v3333_v19 }
 0x937   : > { %v3337_v22 = vmul.f32 %v3335_v20, %v4803_v56  ;;  %v3338_v23 = vmul.f32 %v3336_v21, %v4811_v62 }
 0x939   : > { %v3339_v24 = vmul.f32 %v3337_v22, %v3337_v22  ;;  %v3340_v25 = vmul.f32 %v3338_v23, %v3338_v23 }
 0x93b   : > { %v3342_v26 = vcombine.high %v3339_v24, %v3339_v24  ;;  %v3344_v7 = vsel %vm5170_vm2, %v3339_v24, 0.0  ;;  %v3347_v28 = vsel %vm565_vm11, %v3340_v25, 0.0 }
 0x93d   : > { %v3345_v3 = vsel %vm5171_vm3, %v3342_v26, 0.0 }
 0x93e   : > { %v3346_v27 = vadd.f32 %v3345_v3, %v3344_v7 }
 0x940   : > { %v3348_v29 = vadd.f32 %v3347_v28, %v3346_v27 }
 0x942   : > { %3349 = vadd.xlane.f32.xlu1 %v3348_v29 }
 0x9cf   : > { %v3350_v4 = vpop.xlane.xlu1 %3349 }
 0x9d0   : > { %v3351_v30 = vmul.f32 0.00390625, %v3350_v4 }
 0x9d2   : > { %v3352_v31 = vadd.f32 1e-05, %v3351_v30 }
 0x9d4   : > { %3939 = vrsqrt.f32 %v3352_v31 }
 0x9de   : > { %v3940_v56 = vpop.eup %3939 }
 0x9df   : > { %v3361_v62 = vrot.slane %v3940_v56, %v4818_v13 }
 0x9e1   : > { %v3364_v11 = vmul.f32 %v3361_v62, %v3338_v23  ;;  %v3363_v32 = vmul.f32 %v3361_v62, %v3337_v22 }
 0x9e3   : > { %3371 = vrot.lane.b32.xlu1 %v3364_v11, %s4282_s25  ;;  %3369 = vrot.lane.b32.xlu0 %v3363_v32, %s4282_s25 }
 0xa55   : > { %v3370_v33 = vpop.permute.xlu0 %3369  ;;  %v3372_v36 = vpop.permute.xlu1 %3371 }
 0xa56   : > { %v3373_v35 = vrot.slane %v3370_v33, 4 }
 0xa58   : > { %v3375_v37 = vsel %vm3374_vm4, %v3373_v35, %v3370_v33  ;;  %v3376_v38 = vsel %vm3374_vm4, %v3373_v35, %v3372_v36 }
 0xa59   : > { %v3379_v39 = vadd.f32 %v3375_v37, %v3365_v34  ;;  %v3380_v40 = vadd.f32 %v3376_v38, %v3366_v42 }
 0xa5b   : > { %3385 = vrot.lane.b32.xlu1 %v3380_v40, %s4272_s20  ;;  %3383 = vrot.lane.b32.xlu0 %v3379_v39, %s4272_s20  ;;  %s5084_s20 = scalar_lea.hbm %s5138_s8, %s3777_s16 }
 0xacd   : > { %v3386_v13 = vpop.permute.xlu1 %3385  ;;  %v3384_v41 = vpop.permute.xlu0 %3383 }
 0xace   : > { %v3388_v43 = vrot.slane %v3386_v13, 4  ;;  %3395 = vst.msk [vmem:[%s413_s18 + $0x8] sm:$0xf] %vm565_vm11, %v3386_v13  ;;  %v3387_v46 = vrot.slane %v3384_v41, 4 }
 0xacf   : > { %3397 = vst.msk [vmem:[%s413_s18 + $0x8] sm:$0xf] %vm3396_vm5, %v4267_v6 }
 0xad0   : > { %v3389_v48 = vsel %vm5172_vm7, %v3387_v46, %v3388_v43 }
 0xad1   : > { %v3391_v45 = vsel %vm989_vm6, %v3384_v41, %v3389_v48 }
 0xad2   : > { %3394 = vst [vmem:[%s413_s18] sm:$0xff] %v3391_v45 }
 0xad3   : > { %4180 = shalt.err (!%p4177_p6)
}
 0xad4   : > { %s4181_s22 = scalar_lea.hbm %s5084_s20, 192  ;;  %s4185_s19 = scalar_lea.hbm %s5138_s8, 384 }
 0xad5   : > { %p4182_p11 = scmp.ne.s32.totalorder %s5084_s20, %s4181_s22  ;;  %p4186_p4 = scmp.lt.u32.totalorder %s5084_s20, %s5138_s8 }
 0xad6   : > { %p4187_p13 = scmp.lt.u32.totalorder %s4185_s19, %s4181_s22  ;;  %p4189_p7 = scmp.lt.u32.totalorder %s4181_s22, %s5084_s20 }
 0xad7   : > { %p4183_p12 = pnand %p4182_p11, %p5173_p3 }
 0xad8   : > { %p4188_p1 = por %p4187_p13, %p4186_p4 }
 0xad9   : > { %p4184_p10 = pneg %p4183_p12 }
 0xada   : > { %p4190_p2 = por %p4189_p7, %p4188_p1 }
 0xadc   : > { %p4191_p0 = pnand %p4190_p2, %p4184_p10 }
 0xade   : > { %4194 = shalt.err (!%p4191_p0)
}
 0xadf   : > { %3808 = dma.vmem_to_hbm [thread:$0]  (%p5173_p3), %s5086_s24, 192, %s5084_s20, %s3399_s11  }
 0xae0 PF: > { %s3425_s18 = sand.u32 1, %s4241_s27   ;;  %p5174_p8 = scmp.ne.s32.totalorder %s5153_s3, 0 }
 0xae1   : > { %p5175_p5 = scmp.ge.s32.totalorder %s4253_s30, 2  ;;  %s3426_s17 = scalar_lea.sflag [#allocation6], %s3425_s18 }
 0xae3   : > { %p3837_p9 = pnand %p5175_p5, %p5174_p8 }
 0xae5   : > { %4236 = dma.done.wait (!%p3837_p9), %s3426_s17, 192  }
 0xae6   : > { %4238 = vsyncadd (!%p3837_p9), %s3426_s17, 4294967104  ;;  %p25_p6 = scmp.ge.s32.totalorder %s4531_s23, 4   ;;  %s5176_s27 = smov %s4245_s28 }
 0xae7   : > { %s5177_s28 = smov %s4249_s29  ;;  %s5178_s29 = smov %s4543_s9 }
 0xae8   : > { %s5179_s30 = smov %s4531_s23  ;;  %27 = sbr.rel (!%p25_p6) target bundleno = 12 (0xc), region = 142 }
 0xaef   :  { %3431 = vsyncpa [#allocation5], 1 }
 0xaf0   :  { %3433 = vsyncpa [#allocation5 + $0x1], 1 }
 0xaf1   :  { %3434 = vsyncpa [#allocation8], 1 }
 0xaf2   :  { %3435 = vsyncpa [#allocation11], 1 }
 0xaf3   :  { %3436 = vsyncpa [#allocation14], 1 }
 0xaf4   :  { %3438 = vsyncpa [#allocation14 + $0x1], 1 }
 0xaf5   :  { %3439 = vsyncpa [#allocation17], 1 }
 0xaf6   :  { %3440 = vsyncpa [#allocation6], 1 }
 0xaf7   :  { %3442 = vsyncpa [#allocation6 + $0x1], 1 }

</bundles_post_ra>
